<compile_context>
chip_gen: v6e
topology: v6e:2x2x1
jax: 0.10.0
libtpu: 0.0.40
codegen_flags: <defaults>
</compile_context>

<pallas_src>
import functools

import jax
import jax.numpy as jnp
from jax.experimental import pallas as pl
from jax.experimental.pallas import tpu as pltpu

# Conv hyper-parameters fixed by the PyTorch module.
K1, S1 = 3, 3     # conv1: Conv1d(1, 6, kernel=3, stride=3)
K2, S2 = 4, 8     # conv2: Conv1d(6, 5, kernel=4, stride=8, bias=False)
K3, S3 = 4, 4     # conv3: Conv1d(5, 2, kernel=4, stride=4)
PERIOD = S1 * S2 * S3           # 96 input samples feed one conv3 output step
COLS_PER_G = S1 * S2            # 24 input samples per conv2 step (12 used)
LANE_BLOCK = 128                # batch lanes per grid step


# ----------------------------------------------------------------------------
# Fused Pallas kernel (lanes = batch)
# ----------------------------------------------------------------------------
def _fused_conv1dnet_kernel(xT_ref, w1g_ref, b1g_ref, w2g_ref, w3r_ref,
                            b3c_ref, wfp_ref, bfc_ref, out_ref, flat_ref,
                            *, l3_len, period, c3):
    """Shapes (NB = lane block = padded batch):
         xT_ref : (L3*96, NB)   input, row = sample position, lane = batch
         w1g_ref: (96, 96)  b1g_ref: (96, 1)   conv1 block weights (per l3 grp)
         w2g_ref: (20, 96)                     conv2 block-diag weights
         w3r_ref: (2, 20)   b3c_ref: (2, 1)    conv3 weights (tap-major cols)
         wfp_ref: (4, 16)   bfc_ref: (4, 1)    fc1, columns permuted to l3*2+c3
         out_ref: (4, NB)   flat_ref: VMEM scratch (16, NB)
    """
    nb = out_ref.shape[-1]
    # Hoist loop-invariant weight loads and lane-broadcasts out of the loop.
    w1g = w1g_ref[...]                                       # (96, 96)
    w2g = w2g_ref[...]                                       # (20, 96)
    w3r = w3r_ref[...]                                       # (2, 20)
    b1b = jnp.broadcast_to(b1g_ref[...], (w1g.shape[0], nb))
    b3b = jnp.broadcast_to(b3c_ref[...], (c3, nb))

    for l3 in range(l3_len):                                 # unrolled (8)
        xg = xT_ref[pl.ds(l3 * period, period), :]           # (96, NB)
        # conv1 + ReLU: rows r = t3*24 + ci*4 + t2 of the needed h1 positions.
        h1 = jnp.maximum(
            jnp.dot(w1g, xg, preferred_element_type=jnp.float32) + b1b, 0.0)
        # conv2 (no bias) + ReLU: rows q = t3*5 + c2.
        h2 = jnp.maximum(
            jnp.dot(w2g, h1, preferred_element_type=jnp.float32), 0.0)
        # conv3 + ReLU: rows c3 for output position l3.
        h3 = jnp.maximum(
            jnp.dot(w3r, h2, preferred_element_type=jnp.float32) + b3b, 0.0)
        # Sublane concat into the flatten scratch (row p = l3*C3 + c3; fc1
        # weight columns are pre-permuted to match, so this IS torch's .view).
        flat_ref[pl.ds(l3 * c3, c3), :] = h3

    # fc1: one (4, 16) @ (16, NB) MXU matmul, lane-dense result.
    out = jnp.dot(wfp_ref[...], flat_ref[...],
                  preferred_element_type=jnp.float32)
    out_ref[...] = out + jnp.broadcast_to(bfc_ref[...], out_ref.shape)


# ----------------------------------------------------------------------------
# One-time weight re-layout (host side, done once per model)
# ----------------------------------------------------------------------------
def prepare_params(params):
    w1, b1 = params["w1"], params["b1"]      # (6,1,3), (6,)
    w2 = params["w2"]                        # (5,6,4)  (bias=False)
    w3, b3 = params["w3"], params["b3"]      # (2,5,4), (2,)
    wf, bf = params["wf"], params["bf"]      # (4,16),  (4,)
    C1, C2, C3 = w1.shape[0], w2.shape[0], w3.shape[0]
    F = wf.shape[0]
    L3 = wf.shape[1] // C3                   # =8, fixed by fc1 in_features

    # conv1 block weight: W1loc[ci*K2+t2, t2*K1+u] = w1[ci,u]; unused input
    # columns (12..23 of each 24-sample conv2 step) stay zero; block-diag over
    # the K3 conv3 taps -> (96, 96).
    w1r = w1.reshape(C1, K1)
    w1loc = (w1r[:, None, None, :] *
             jnp.eye(K2, dtype=w1.dtype)[None, :, :, None]
             ).reshape(C1 * K2, K2 * K1)
    w1loc = jnp.pad(w1loc, ((0, 0), (0, COLS_PER_G - K2 * K1)))
    eye_g = jnp.eye(K3, dtype=w1.dtype)
    w1g = (eye_g[:, None, :, None] * w1loc[None, :, None, :]
           ).reshape(K3 * C1 * K2, K3 * COLS_PER_G)                 # (96, 96)
    b1g = jnp.tile(jnp.repeat(b1, K2), K3).reshape(-1, 1)           # (96, 1)

    # conv2 block-diag weight: W2g[t3*C2+c2, t3*24 + ci*K2+t2] = w2[c2,ci,t2]
    w2loc = w2.reshape(C2, C1 * K2)                                 # (5, 24)
    w2g = (eye_g[:, None, :, None] * w2loc[None, :, None, :]
           ).reshape(K3 * C2, K3 * C1 * K2)                         # (20, 96)

    # conv3 weight with tap-major columns: W3r[c3, t3*C2+c2] = w3[c3,c2,t3]
    w3r = jnp.transpose(w3, (0, 2, 1)).reshape(C3, K3 * C2)         # (2, 20)
    b3c = b3.reshape(C3, 1)

    # fc1 with columns permuted to the kernel's flatten order p = l3*C3 + c3
    wfp = jnp.transpose(wf.reshape(F, C3, L3), (0, 2, 1)).reshape(F, C3 * L3)
    bfc = bf.reshape(F, 1)
    return {"w1g": w1g, "b1g": b1g, "w2g": w2g, "w3r": w3r, "b3c": b3c,
            "wfp": wfp, "bfc": bfc}


# ----------------------------------------------------------------------------
# Forward: light wrapper (transpose + pad), one gridded pallas_call
# ----------------------------------------------------------------------------
def conv1d_net_forward(x, kp, *, lane_block=LANE_BLOCK):
    """x: (B, 1, H, W) float32 (PyTorch NCHW); kp: output of prepare_params."""
    B = x.shape[0]
    x3 = x.reshape(B, x.shape[1], -1)                  # (B, 1, L0), like torch
    assert x3.shape[1] == 1, "Conv1dNet expects a single input channel"
    xf = x3[:, 0, :]                                   # (B, L0)
    L0 = xf.shape[1]
    L1 = (L0 - K1) // S1 + 1
    L2 = (L1 - K2) // S2 + 1
    L3 = (L2 - K3) // S3 + 1

    C3 = kp["w3r"].shape[0]
    F = kp["wfp"].shape[0]
    assert C3 * L3 == kp["wfp"].shape[1], "input length incompatible with fc1"

    # Each conv3 output position consumes a 96-sample period of the input
    # (4 contiguous 12-sample windows every 24 samples; the unused samples are
    # masked by zero columns in the conv1 block weight).
    l_need = PERIOD * L3
    if L0 >= l_need:
        xf = xf[:, :l_need]
    else:
        xf = jnp.pad(xf, ((0, 0), (0, l_need - L0)))

    # Batch on lanes, padded to a multiple of the lane block.
    nb = lane_block
    b_pad = ((B + nb - 1) // nb) * nb
    xT = jnp.transpose(xf)                             # (l_need, B)
    if b_pad != B:
        xT = jnp.pad(xT, ((0, 0), (0, b_pad - B)))

    kernel = functools.partial(_fused_conv1dnet_kernel,
                               l3_len=L3, period=PERIOD, c3=C3)

    def full_spec(shape):
        return pl.BlockSpec(shape, lambda i: (0,) * len(shape))

    out = pl.pallas_call(
        kernel,
        out_shape=jax.ShapeDtypeStruct((F, b_pad), jnp.float32),
        grid=(b_pad // nb,),
        in_specs=[
            pl.BlockSpec((l_need, nb), lambda i: (0, i)),      # input stream
            full_spec(kp["w1g"].shape), full_spec(kp["b1g"].shape),
            full_spec(kp["w2g"].shape),
            full_spec(kp["w3r"].shape), full_spec(kp["b3c"].shape),
            full_spec(kp["wfp"].shape), full_spec(kp["bfc"].shape),
        ],
        out_specs=pl.BlockSpec((F, nb), lambda i: (0, i)),
        scratch_shapes=[pltpu.VMEM((C3 * L3, nb), jnp.float32)],
        compiler_params=pltpu.CompilerParams(
            dimension_semantics=("parallel",),        # shards across v7x's 2 TCs
            vmem_limit_bytes=32 * 1024 * 1024),       # ~1 MiB/step actually used
    )(xT, kp["w1g"], kp["b1g"], kp["w2g"], kp["w3r"], kp["b3c"],
      kp["wfp"], kp["bfc"])

    return jnp.transpose(out[:, :B])                   # (B, 4)


# ----------------------------------------------------------------------------
# Pure-JAX reference (correctness check only)
# ----------------------------------------------------------------------------
def reference_forward(x, params):
    B = x.shape[0]
    h = x.reshape(B, x.shape[1], -1)
    dn = ("NCH", "OIH", "NCH")
    h = jax.lax.conv_general_dilated(h, params["w1"], (S1,), "VALID",
                                     dimension_numbers=dn)
    h = jax.nn.relu(h + params["b1"][None, :, None])
    h = jax.lax.conv_general_dilated(h, params["w2"], (S2,), "VALID",
                                     dimension_numbers=dn)
    h = jax.nn.relu(h)
    h = jax.lax.conv_general_dilated(h, params["w3"], (S3,), "VALID",
                                     dimension_numbers=dn)
    h = jax.nn.relu(h + params["b3"][None, :, None])
    h = h.reshape(B, -1)
    return h @ params["wf"].T + params["bf"][None, :]


# ----------------------------------------------------------------------------
# Deterministic parameter init (PyTorch-style uniform(-1/sqrt(fan_in), ...))
# ----------------------------------------------------------------------------
def init_params(key):
    ks = jax.random.split(key, 7)

    def uinit(k, shape, fan_in):
        bound = 1.0 / float(fan_in) ** 0.5
        return jax.random.uniform(k, shape, jnp.float32, -bound, bound)

    return {
        "w1": uinit(ks[0], (6, 1, 3), 1 * 3),
        "b1": uinit(ks[1], (6,), 1 * 3),
        "w2": uinit(ks[2], (5, 6, 4), 6 * 4),
        "w3": uinit(ks[3], (2, 5, 4), 5 * 4),
        "b3": uinit(ks[4], (2,), 5 * 4),
        "wf": uinit(ks[5], (4, 16), 16),
        "bf": uinit(ks[6], (4,), 16),
    }


if __name__ == "__main__":
    key = jax.random.PRNGKey(0)
    pkey, xkey = jax.random.split(key)
    params = init_params(pkey)
    kparams = prepare_params(params)          # one-time weight re-layout

    # (B=2, C=1, H=24, W=32) -> L0=768 -> L1=256 -> L2=32 -> L3=8 -> flat 16 -> 4
    x = jax.random.normal(xkey, (2, 1, 24, 32), dtype=jnp.float32)

    fwd = jax.jit(conv1d_net_forward)
    out = jax.block_until_ready(fwd(x, kparams))
    ref = jax.block_until_ready(reference_forward(x, params))

    assert out.shape == (2, 4), out.shape
    assert jnp.allclose(out, ref, atol=1e-2, rtol=1e-2), (out, ref)
    print("KERNEL_OK")
</pallas_src>

<mosaic_0001>
module attributes {stable_mosaic.version = 11 : i64} {
  func.func @_fused_conv1dnet_kernel(%arg0: i32, %arg1: memref<768x128xf32, #tpu.memory_space<vmem>>, %arg2: memref<96x96xf32, #tpu.memory_space<vmem>>, %arg3: memref<96x1xf32, #tpu.memory_space<vmem>>, %arg4: memref<20x96xf32, #tpu.memory_space<vmem>>, %arg5: memref<2x20xf32, #tpu.memory_space<vmem>>, %arg6: memref<2x1xf32, #tpu.memory_space<vmem>>, %arg7: memref<4x16xf32, #tpu.memory_space<vmem>>, %arg8: memref<4x1xf32, #tpu.memory_space<vmem>>, %arg9: memref<4x128xf32, #tpu.memory_space<vmem>>, %arg10: memref<16x128xf32, #tpu.memory_space<vmem>>) attributes {dimension_semantics = [#tpu.dimension_semantics<parallel>], iteration_bounds = array<i64: 1>, scalar_prefetch = 0 : i64, scratch_operands = 1 : i64, tpu.core_type = #tpu.core_type<tc>, window_params = [{transform_indices = @transform_0, window_bounds = array<i64: 768, 128>}, {pipeline_mode = #tpu.pipeline_mode<synchronous>, transform_indices = @transform_1, window_bounds = array<i64: 96, 96>}, {pipeline_mode = #tpu.pipeline_mode<synchronous>, transform_indices = @transform_2, window_bounds = array<i64: 96, 1>}, {pipeline_mode = #tpu.pipeline_mode<synchronous>, transform_indices = @transform_3, window_bounds = array<i64: 20, 96>}, {pipeline_mode = #tpu.pipeline_mode<synchronous>, transform_indices = @transform_4, window_bounds = array<i64: 2, 20>}, {pipeline_mode = #tpu.pipeline_mode<synchronous>, transform_indices = @transform_5, window_bounds = array<i64: 2, 1>}, {pipeline_mode = #tpu.pipeline_mode<synchronous>, transform_indices = @transform_6, window_bounds = array<i64: 4, 16>}, {pipeline_mode = #tpu.pipeline_mode<synchronous>, transform_indices = @transform_7, window_bounds = array<i64: 4, 1>}, {transform_indices = @transform_8, window_bounds = array<i64: 4, 128>}]} {
    %c0 = arith.constant 0 : index
    %c0_0 = arith.constant 0 : index
    %0 = vector.load %arg2[%c0, %c0_0] : memref<96x96xf32, #tpu.memory_space<vmem>>, vector<96x96xf32>
    %c0_1 = arith.constant 0 : index
    %c0_2 = arith.constant 0 : index
    %1 = vector.load %arg4[%c0_1, %c0_2] : memref<20x96xf32, #tpu.memory_space<vmem>>, vector<20x96xf32>
    %c0_3 = arith.constant 0 : index
    %c0_4 = arith.constant 0 : index
    %2 = vector.load %arg5[%c0_3, %c0_4] : memref<2x20xf32, #tpu.memory_space<vmem>>, vector<2x20xf32>
    %c0_5 = arith.constant 0 : index
    %c0_6 = arith.constant 0 : index
    %3 = vector.load %arg3[%c0_5, %c0_6] : memref<96x1xf32, #tpu.memory_space<vmem>>, vector<96x1xf32>
    %4 = vector.shape_cast %3 : vector<96x1xf32> to vector<96x1xf32>
    %5 = vector.broadcast %4 : vector<96x1xf32> to vector<96x128xf32>
    %c0_7 = arith.constant 0 : index
    %c0_8 = arith.constant 0 : index
    %6 = vector.load %arg6[%c0_7, %c0_8] : memref<2x1xf32, #tpu.memory_space<vmem>>, vector<2x1xf32>
    %7 = vector.shape_cast %6 : vector<2x1xf32> to vector<2x1xf32>
    %8 = vector.broadcast %7 : vector<2x1xf32> to vector<2x128xf32>
    %c0_9 = arith.constant 0 : index
    %c0_10 = arith.constant 0 : index
    %9 = vector.load %arg1[%c0_9, %c0_10] : memref<768x128xf32, #tpu.memory_space<vmem>>, vector<96x128xf32>
    %cst = arith.constant dense<0.000000e+00> : vector<96x128xf32>
    %10 = tpu.matmul %0, %9, %cst {dimension_numbers = #tpu.dot_dimension_numbers<[1], [0], [0], [1], [0, 0, 1, 1], [], []>} : vector<96x96xf32>, vector<96x128xf32>, vector<96x128xf32> -> vector<96x128xf32>
    %11 = arith.addf %10, %5 : vector<96x128xf32>
    %cst_11 = arith.constant 0.000000e+00 : f32
    %12 = vector.broadcast %cst_11 : f32 to vector<96x128xf32>
    %13 = arith.maximumf %11, %12 : vector<96x128xf32>
    %cst_12 = arith.constant dense<0.000000e+00> : vector<20x128xf32>
    %14 = tpu.matmul %1, %13, %cst_12 {dimension_numbers = #tpu.dot_dimension_numbers<[1], [0], [0], [1], [0, 0, 1, 1], [], []>} : vector<20x96xf32>, vector<96x128xf32>, vector<20x128xf32> -> vector<20x128xf32>
    %cst_13 = arith.constant 0.000000e+00 : f32
    %15 = vector.broadcast %cst_13 : f32 to vector<20x128xf32>
    %16 = arith.maximumf %14, %15 : vector<20x128xf32>
    %cst_14 = arith.constant dense<0.000000e+00> : vector<2x128xf32>
    %17 = tpu.matmul %2, %16, %cst_14 {dimension_numbers = #tpu.dot_dimension_numbers<[1], [0], [0], [1], [0, 0, 1, 1], [], []>} : vector<2x20xf32>, vector<20x128xf32>, vector<2x128xf32> -> vector<2x128xf32>
    %18 = arith.addf %17, %8 : vector<2x128xf32>
    %cst_15 = arith.constant 0.000000e+00 : f32
    %19 = vector.broadcast %cst_15 : f32 to vector<2x128xf32>
    %20 = arith.maximumf %18, %19 : vector<2x128xf32>
    %c0_16 = arith.constant 0 : index
    %c0_17 = arith.constant 0 : index
    %21 = vector.load %arg10[%c0_16, %c0_17] : memref<16x128xf32, #tpu.memory_space<vmem>>, vector<2x128xf32>
    tpu.vector_store %arg10[%c0_16, %c0_17], %20 {strides = array<i32>} : memref<16x128xf32, #tpu.memory_space<vmem>>, vector<2x128xf32>,
    %c96 = arith.constant 96 : index
    %c0_18 = arith.constant 0 : index
    %22 = vector.load %arg1[%c96, %c0_18] : memref<768x128xf32, #tpu.memory_space<vmem>>, vector<96x128xf32>
    %cst_19 = arith.constant dense<0.000000e+00> : vector<96x128xf32>
    %23 = tpu.matmul %0, %22, %cst_19 {dimension_numbers = #tpu.dot_dimension_numbers<[1], [0], [0], [1], [0, 0, 1, 1], [], []>} : vector<96x96xf32>, vector<96x128xf32>, vector<96x128xf32> -> vector<96x128xf32>
    %24 = arith.addf %23, %5 : vector<96x128xf32>
    %cst_20 = arith.constant 0.000000e+00 : f32
    %25 = vector.broadcast %cst_20 : f32 to vector<96x128xf32>
    %26 = arith.maximumf %24, %25 : vector<96x128xf32>
    %cst_21 = arith.constant dense<0.000000e+00> : vector<20x128xf32>
    %27 = tpu.matmul %1, %26, %cst_21 {dimension_numbers = #tpu.dot_dimension_numbers<[1], [0], [0], [1], [0, 0, 1, 1], [], []>} : vector<20x96xf32>, vector<96x128xf32>, vector<20x128xf32> -> vector<20x128xf32>
    %cst_22 = arith.constant 0.000000e+00 : f32
    %28 = vector.broadcast %cst_22 : f32 to vector<20x128xf32>
    %29 = arith.maximumf %27, %28 : vector<20x128xf32>
    %cst_23 = arith.constant dense<0.000000e+00> : vector<2x128xf32>
    %30 = tpu.matmul %2, %29, %cst_23 {dimension_numbers = #tpu.dot_dimension_numbers<[1], [0], [0], [1], [0, 0, 1, 1], [], []>} : vector<2x20xf32>, vector<20x128xf32>, vector<2x128xf32> -> vector<2x128xf32>
    %31 = arith.addf %30, %8 : vector<2x128xf32>
    %cst_24 = arith.constant 0.000000e+00 : f32
    %32 = vector.broadcast %cst_24 : f32 to vector<2x128xf32>
    %33 = arith.maximumf %31, %32 : vector<2x128xf32>
    %c2 = arith.constant 2 : index
    %c0_25 = arith.constant 0 : index
    %34 = vector.load %arg10[%c2, %c0_25] : memref<16x128xf32, #tpu.memory_space<vmem>>, vector<2x128xf32>
    tpu.vector_store %arg10[%c2, %c0_25], %33 {strides = array<i32>} : memref<16x128xf32, #tpu.memory_space<vmem>>, vector<2x128xf32>,
    %c192 = arith.constant 192 : index
    %c0_26 = arith.constant 0 : index
    %35 = vector.load %arg1[%c192, %c0_26] : memref<768x128xf32, #tpu.memory_space<vmem>>, vector<96x128xf32>
    %cst_27 = arith.constant dense<0.000000e+00> : vector<96x128xf32>
    %36 = tpu.matmul %0, %35, %cst_27 {dimension_numbers = #tpu.dot_dimension_numbers<[1], [0], [0], [1], [0, 0, 1, 1], [], []>} : vector<96x96xf32>, vector<96x128xf32>, vector<96x128xf32> -> vector<96x128xf32>
    %37 = arith.addf %36, %5 : vector<96x128xf32>
    %cst_28 = arith.constant 0.000000e+00 : f32
    %38 = vector.broadcast %cst_28 : f32 to vector<96x128xf32>
    %39 = arith.maximumf %37, %38 : vector<96x128xf32>
    %cst_29 = arith.constant dense<0.000000e+00> : vector<20x128xf32>
    %40 = tpu.matmul %1, %39, %cst_29 {dimension_numbers = #tpu.dot_dimension_numbers<[1], [0], [0], [1], [0, 0, 1, 1], [], []>} : vector<20x96xf32>, vector<96x128xf32>, vector<20x128xf32> -> vector<20x128xf32>
    %cst_30 = arith.constant 0.000000e+00 : f32
    %41 = vector.broadcast %cst_30 : f32 to vector<20x128xf32>
    %42 = arith.maximumf %40, %41 : vector<20x128xf32>
    %cst_31 = arith.constant dense<0.000000e+00> : vector<2x128xf32>
    %43 = tpu.matmul %2, %42, %cst_31 {dimension_numbers = #tpu.dot_dimension_numbers<[1], [0], [0], [1], [0, 0, 1, 1], [], []>} : vector<2x20xf32>, vector<20x128xf32>, vector<2x128xf32> -> vector<2x128xf32>
    %44 = arith.addf %43, %8 : vector<2x128xf32>
    %cst_32 = arith.constant 0.000000e+00 : f32
    %45 = vector.broadcast %cst_32 : f32 to vector<2x128xf32>
    %46 = arith.maximumf %44, %45 : vector<2x128xf32>
    %c4 = arith.constant 4 : index
    %c0_33 = arith.constant 0 : index
    %47 = vector.load %arg10[%c4, %c0_33] : memref<16x128xf32, #tpu.memory_space<vmem>>, vector<2x128xf32>
    tpu.vector_store %arg10[%c4, %c0_33], %46 {strides = array<i32>} : memref<16x128xf32, #tpu.memory_space<vmem>>, vector<2x128xf32>,
    %c288 = arith.constant 288 : index
    %c0_34 = arith.constant 0 : index
    %48 = vector.load %arg1[%c288, %c0_34] : memref<768x128xf32, #tpu.memory_space<vmem>>, vector<96x128xf32>
    %cst_35 = arith.constant dense<0.000000e+00> : vector<96x128xf32>
    %49 = tpu.matmul %0, %48, %cst_35 {dimension_numbers = #tpu.dot_dimension_numbers<[1], [0], [0], [1], [0, 0, 1, 1], [], []>} : vector<96x96xf32>, vector<96x128xf32>, vector<96x128xf32> -> vector<96x128xf32>
    %50 = arith.addf %49, %5 : vector<96x128xf32>
    %cst_36 = arith.constant 0.000000e+00 : f32
    %51 = vector.broadcast %cst_36 : f32 to vector<96x128xf32>
    %52 = arith.maximumf %50, %51 : vector<96x128xf32>
    %cst_37 = arith.constant dense<0.000000e+00> : vector<20x128xf32>
    %53 = tpu.matmul %1, %52, %cst_37 {dimension_numbers = #tpu.dot_dimension_numbers<[1], [0], [0], [1], [0, 0, 1, 1], [], []>} : vector<20x96xf32>, vector<96x128xf32>, vector<20x128xf32> -> vector<20x128xf32>
    %cst_38 = arith.constant 0.000000e+00 : f32
    %54 = vector.broadcast %cst_38 : f32 to vector<20x128xf32>
    %55 = arith.maximumf %53, %54 : vector<20x128xf32>
    %cst_39 = arith.constant dense<0.000000e+00> : vector<2x128xf32>
    %56 = tpu.matmul %2, %55, %cst_39 {dimension_numbers = #tpu.dot_dimension_numbers<[1], [0], [0], [1], [0, 0, 1, 1], [], []>} : vector<2x20xf32>, vector<20x128xf32>, vector<2x128xf32> -> vector<2x128xf32>
    %57 = arith.addf %56, %8 : vector<2x128xf32>
    %cst_40 = arith.constant 0.000000e+00 : f32
    %58 = vector.broadcast %cst_40 : f32 to vector<2x128xf32>
    %59 = arith.maximumf %57, %58 : vector<2x128xf32>
    %c6 = arith.constant 6 : index
    %c0_41 = arith.constant 0 : index
    %60 = vector.load %arg10[%c6, %c0_41] : memref<16x128xf32, #tpu.memory_space<vmem>>, vector<2x128xf32>
    tpu.vector_store %arg10[%c6, %c0_41], %59 {strides = array<i32>} : memref<16x128xf32, #tpu.memory_space<vmem>>, vector<2x128xf32>,
    %c384 = arith.constant 384 : index
    %c0_42 = arith.constant 0 : index
    %61 = vector.load %arg1[%c384, %c0_42] : memref<768x128xf32, #tpu.memory_space<vmem>>, vector<96x128xf32>
    %cst_43 = arith.constant dense<0.000000e+00> : vector<96x128xf32>
    %62 = tpu.matmul %0, %61, %cst_43 {dimension_numbers = #tpu.dot_dimension_numbers<[1], [0], [0], [1], [0, 0, 1, 1], [], []>} : vector<96x96xf32>, vector<96x128xf32>, vector<96x128xf32> -> vector<96x128xf32>
    %63 = arith.addf %62, %5 : vector<96x128xf32>
    %cst_44 = arith.constant 0.000000e+00 : f32
    %64 = vector.broadcast %cst_44 : f32 to vector<96x128xf32>
    %65 = arith.maximumf %63, %64 : vector<96x128xf32>
    %cst_45 = arith.constant dense<0.000000e+00> : vector<20x128xf32>
    %66 = tpu.matmul %1, %65, %cst_45 {dimension_numbers = #tpu.dot_dimension_numbers<[1], [0], [0], [1], [0, 0, 1, 1], [], []>} : vector<20x96xf32>, vector<96x128xf32>, vector<20x128xf32> -> vector<20x128xf32>
    %cst_46 = arith.constant 0.000000e+00 : f32
    %67 = vector.broadcast %cst_46 : f32 to vector<20x128xf32>
    %68 = arith.maximumf %66, %67 : vector<20x128xf32>
    %cst_47 = arith.constant dense<0.000000e+00> : vector<2x128xf32>
    %69 = tpu.matmul %2, %68, %cst_47 {dimension_numbers = #tpu.dot_dimension_numbers<[1], [0], [0], [1], [0, 0, 1, 1], [], []>} : vector<2x20xf32>, vector<20x128xf32>, vector<2x128xf32> -> vector<2x128xf32>
    %70 = arith.addf %69, %8 : vector<2x128xf32>
    %cst_48 = arith.constant 0.000000e+00 : f32
    %71 = vector.broadcast %cst_48 : f32 to vector<2x128xf32>
    %72 = arith.maximumf %70, %71 : vector<2x128xf32>
    %c8 = arith.constant 8 : index
    %c0_49 = arith.constant 0 : index
    %73 = vector.load %arg10[%c8, %c0_49] : memref<16x128xf32, #tpu.memory_space<vmem>>, vector<2x128xf32>
    tpu.vector_store %arg10[%c8, %c0_49], %72 {strides = array<i32>} : memref<16x128xf32, #tpu.memory_space<vmem>>, vector<2x128xf32>,
    %c480 = arith.constant 480 : index
    %c0_50 = arith.constant 0 : index
    %74 = vector.load %arg1[%c480, %c0_50] : memref<768x128xf32, #tpu.memory_space<vmem>>, vector<96x128xf32>
    %cst_51 = arith.constant dense<0.000000e+00> : vector<96x128xf32>
    %75 = tpu.matmul %0, %74, %cst_51 {dimension_numbers = #tpu.dot_dimension_numbers<[1], [0], [0], [1], [0, 0, 1, 1], [], []>} : vector<96x96xf32>, vector<96x128xf32>, vector<96x128xf32> -> vector<96x128xf32>
    %76 = arith.addf %75, %5 : vector<96x128xf32>
    %cst_52 = arith.constant 0.000000e+00 : f32
    %77 = vector.broadcast %cst_52 : f32 to vector<96x128xf32>
    %78 = arith.maximumf %76, %77 : vector<96x128xf32>
    %cst_53 = arith.constant dense<0.000000e+00> : vector<20x128xf32>
    %79 = tpu.matmul %1, %78, %cst_53 {dimension_numbers = #tpu.dot_dimension_numbers<[1], [0], [0], [1], [0, 0, 1, 1], [], []>} : vector<20x96xf32>, vector<96x128xf32>, vector<20x128xf32> -> vector<20x128xf32>
    %cst_54 = arith.constant 0.000000e+00 : f32
    %80 = vector.broadcast %cst_54 : f32 to vector<20x128xf32>
    %81 = arith.maximumf %79, %80 : vector<20x128xf32>
    %cst_55 = arith.constant dense<0.000000e+00> : vector<2x128xf32>
    %82 = tpu.matmul %2, %81, %cst_55 {dimension_numbers = #tpu.dot_dimension_numbers<[1], [0], [0], [1], [0, 0, 1, 1], [], []>} : vector<2x20xf32>, vector<20x128xf32>, vector<2x128xf32> -> vector<2x128xf32>
    %83 = arith.addf %82, %8 : vector<2x128xf32>
    %cst_56 = arith.constant 0.000000e+00 : f32
    %84 = vector.broadcast %cst_56 : f32 to vector<2x128xf32>
    %85 = arith.maximumf %83, %84 : vector<2x128xf32>
    %c10 = arith.constant 10 : index
    %c0_57 = arith.constant 0 : index
    %86 = vector.load %arg10[%c10, %c0_57] : memref<16x128xf32, #tpu.memory_space<vmem>>, vector<2x128xf32>
    tpu.vector_store %arg10[%c10, %c0_57], %85 {strides = array<i32>} : memref<16x128xf32, #tpu.memory_space<vmem>>, vector<2x128xf32>,
    %c576 = arith.constant 576 : index
    %c0_58 = arith.constant 0 : index
    %87 = vector.load %arg1[%c576, %c0_58] : memref<768x128xf32, #tpu.memory_space<vmem>>, vector<96x128xf32>
    %cst_59 = arith.constant dense<0.000000e+00> : vector<96x128xf32>
    %88 = tpu.matmul %0, %87, %cst_59 {dimension_numbers = #tpu.dot_dimension_numbers<[1], [0], [0], [1], [0, 0, 1, 1], [], []>} : vector<96x96xf32>, vector<96x128xf32>, vector<96x128xf32> -> vector<96x128xf32>
    %89 = arith.addf %88, %5 : vector<96x128xf32>
    %cst_60 = arith.constant 0.000000e+00 : f32
    %90 = vector.broadcast %cst_60 : f32 to vector<96x128xf32>
    %91 = arith.maximumf %89, %90 : vector<96x128xf32>
    %cst_61 = arith.constant dense<0.000000e+00> : vector<20x128xf32>
    %92 = tpu.matmul %1, %91, %cst_61 {dimension_numbers = #tpu.dot_dimension_numbers<[1], [0], [0], [1], [0, 0, 1, 1], [], []>} : vector<20x96xf32>, vector<96x128xf32>, vector<20x128xf32> -> vector<20x128xf32>
    %cst_62 = arith.constant 0.000000e+00 : f32
    %93 = vector.broadcast %cst_62 : f32 to vector<20x128xf32>
    %94 = arith.maximumf %92, %93 : vector<20x128xf32>
    %cst_63 = arith.constant dense<0.000000e+00> : vector<2x128xf32>
    %95 = tpu.matmul %2, %94, %cst_63 {dimension_numbers = #tpu.dot_dimension_numbers<[1], [0], [0], [1], [0, 0, 1, 1], [], []>} : vector<2x20xf32>, vector<20x128xf32>, vector<2x128xf32> -> vector<2x128xf32>
    %96 = arith.addf %95, %8 : vector<2x128xf32>
    %cst_64 = arith.constant 0.000000e+00 : f32
    %97 = vector.broadcast %cst_64 : f32 to vector<2x128xf32>
    %98 = arith.maximumf %96, %97 : vector<2x128xf32>
    %c12 = arith.constant 12 : index
    %c0_65 = arith.constant 0 : index
    %99 = vector.load %arg10[%c12, %c0_65] : memref<16x128xf32, #tpu.memory_space<vmem>>, vector<2x128xf32>
    tpu.vector_store %arg10[%c12, %c0_65], %98 {strides = array<i32>} : memref<16x128xf32, #tpu.memory_space<vmem>>, vector<2x128xf32>,
    %c672 = arith.constant 672 : index
    %c0_66 = arith.constant 0 : index
    %100 = vector.load %arg1[%c672, %c0_66] : memref<768x128xf32, #tpu.memory_space<vmem>>, vector<96x128xf32>
    %cst_67 = arith.constant dense<0.000000e+00> : vector<96x128xf32>
    %101 = tpu.matmul %0, %100, %cst_67 {dimension_numbers = #tpu.dot_dimension_numbers<[1], [0], [0], [1], [0, 0, 1, 1], [], []>} : vector<96x96xf32>, vector<96x128xf32>, vector<96x128xf32> -> vector<96x128xf32>
    %102 = arith.addf %101, %5 : vector<96x128xf32>
    %cst_68 = arith.constant 0.000000e+00 : f32
    %103 = vector.broadcast %cst_68 : f32 to vector<96x128xf32>
    %104 = arith.maximumf %102, %103 : vector<96x128xf32>
    %cst_69 = arith.constant dense<0.000000e+00> : vector<20x128xf32>
    %105 = tpu.matmul %1, %104, %cst_69 {dimension_numbers = #tpu.dot_dimension_numbers<[1], [0], [0], [1], [0, 0, 1, 1], [], []>} : vector<20x96xf32>, vector<96x128xf32>, vector<20x128xf32> -> vector<20x128xf32>
    %cst_70 = arith.constant 0.000000e+00 : f32
    %106 = vector.broadcast %cst_70 : f32 to vector<20x128xf32>
    %107 = arith.maximumf %105, %106 : vector<20x128xf32>
    %cst_71 = arith.constant dense<0.000000e+00> : vector<2x128xf32>
    %108 = tpu.matmul %2, %107, %cst_71 {dimension_numbers = #tpu.dot_dimension_numbers<[1], [0], [0], [1], [0, 0, 1, 1], [], []>} : vector<2x20xf32>, vector<20x128xf32>, vector<2x128xf32> -> vector<2x128xf32>
    %109 = arith.addf %108, %8 : vector<2x128xf32>
    %cst_72 = arith.constant 0.000000e+00 : f32
    %110 = vector.broadcast %cst_72 : f32 to vector<2x128xf32>
    %111 = arith.maximumf %109, %110 : vector<2x128xf32>
    %c14 = arith.constant 14 : index
    %c0_73 = arith.constant 0 : index
    %112 = vector.load %arg10[%c14, %c0_73] : memref<16x128xf32, #tpu.memory_space<vmem>>, vector<2x128xf32>
    tpu.vector_store %arg10[%c14, %c0_73], %111 {strides = array<i32>} : memref<16x128xf32, #tpu.memory_space<vmem>>, vector<2x128xf32>,
    %c0_74 = arith.constant 0 : index
    %c0_75 = arith.constant 0 : index
    %113 = vector.load %arg7[%c0_74, %c0_75] : memref<4x16xf32, #tpu.memory_space<vmem>>, vector<4x16xf32>
    %c0_76 = arith.constant 0 : index
    %c0_77 = arith.constant 0 : index
    %114 = vector.load %arg10[%c0_76, %c0_77] : memref<16x128xf32, #tpu.memory_space<vmem>>, vector<16x128xf32>
    %cst_78 = arith.constant dense<0.000000e+00> : vector<4x128xf32>
    %115 = tpu.matmul %113, %114, %cst_78 {dimension_numbers = #tpu.dot_dimension_numbers<[1], [0], [0], [1], [0, 0, 1, 1], [], []>} : vector<4x16xf32>, vector<16x128xf32>, vector<4x128xf32> -> vector<4x128xf32>
    %c0_79 = arith.constant 0 : index
    %c0_80 = arith.constant 0 : index
    %116 = vector.load %arg8[%c0_79, %c0_80] : memref<4x1xf32, #tpu.memory_space<vmem>>, vector<4x1xf32>
    %117 = vector.shape_cast %116 : vector<4x1xf32> to vector<4x1xf32>
    %118 = vector.broadcast %117 : vector<4x1xf32> to vector<4x128xf32>
    %119 = arith.addf %115, %118 : vector<4x128xf32>
    %c0_81 = arith.constant 0 : index
    %c0_82 = arith.constant 0 : index
    %120 = vector.load %arg9[%c0_81, %c0_82] : memref<4x128xf32, #tpu.memory_space<vmem>>, vector<4x128xf32>
    tpu.vector_store %arg9[%c0_81, %c0_82], %119 {strides = array<i32>} : memref<4x128xf32, #tpu.memory_space<vmem>>, vector<4x128xf32>,
    return
  }
  func.func @transform_0(%arg0: i32) -> (i32, i32) {
    %c0_i32 = arith.constant 0 : i32
    %c0_i32_0 = arith.constant 0 : i32
    return %c0_i32, %arg0 : i32, i32
  }
  func.func @transform_1(%arg0: i32) -> (i32, i32) {
    %c0_i32 = arith.constant 0 : i32
    %c0_i32_0 = arith.constant 0 : i32
    %c0_i32_1 = arith.constant 0 : i32
    return %c0_i32, %c0_i32_0 : i32, i32
  }
  func.func @transform_2(%arg0: i32) -> (i32, i32) {
    %c0_i32 = arith.constant 0 : i32
    %c0_i32_0 = arith.constant 0 : i32
    %c0_i32_1 = arith.constant 0 : i32
    return %c0_i32, %c0_i32_0 : i32, i32
  }
  func.func @transform_3(%arg0: i32) -> (i32, i32) {
    %c0_i32 = arith.constant 0 : i32
    %c0_i32_0 = arith.constant 0 : i32
    %c0_i32_1 = arith.constant 0 : i32
    return %c0_i32, %c0_i32_0 : i32, i32
  }
  func.func @transform_4(%arg0: i32) -> (i32, i32) {
    %c0_i32 = arith.constant 0 : i32
    %c0_i32_0 = arith.constant 0 : i32
    %c0_i32_1 = arith.constant 0 : i32
    return %c0_i32, %c0_i32_0 : i32, i32
  }
  func.func @transform_5(%arg0: i32) -> (i32, i32) {
    %c0_i32 = arith.constant 0 : i32
    %c0_i32_0 = arith.constant 0 : i32
    %c0_i32_1 = arith.constant 0 : i32
    return %c0_i32, %c0_i32_0 : i32, i32
  }
  func.func @transform_6(%arg0: i32) -> (i32, i32) {
    %c0_i32 = arith.constant 0 : i32
    %c0_i32_0 = arith.constant 0 : i32
    %c0_i32_1 = arith.constant 0 : i32
    return %c0_i32, %c0_i32_0 : i32, i32
  }
  func.func @transform_7(%arg0: i32) -> (i32, i32) {
    %c0_i32 = arith.constant 0 : i32
    %c0_i32_0 = arith.constant 0 : i32
    %c0_i32_1 = arith.constant 0 : i32
    return %c0_i32, %c0_i32_0 : i32, i32
  }
  func.func @transform_8(%arg0: i32) -> (i32, i32) {
    %c0_i32 = arith.constant 0 : i32
    %c0_i32_0 = arith.constant 0 : i32
    return %c0_i32, %arg0 : i32, i32
  }
}

</mosaic_0001>

<bundles_post_ra>
// kernel: conv1d_net_forward.1
= control target key start
LH: loop header
LB: loop body
LE: loop exit
PB: predicated region body
PF: predicated region fallthrough
CT: control target
= control target key end

     0   :  { %v3902_v2 = vmov 0   ;;  %vm135_vm0 = vcmask 785408   ;;  %v3903_v51 = vmov 0.0   ;;  %vm3904_vm1 = vmmov 0   ;;  %s5043_s0 = inlined_call_operand.vmem [shape: f32[768,128], index: 0, kind: input, shape index: {}]   ;;  %s5044_s1 = inlined_call_operand.vmem [shape: f32[96,96], index: 1, kind: input, shape index: {}]   ;;  %s5045_s2 = inlined_call_operand.vmem [shape: f32[96,1], index: 2, kind: input, shape index: {}]   ;;  %s5046_s5 = inlined_call_operand.vmem [shape: f32[2,1], index: 5, kind: input, shape index: {}]   ;;  %s5047_s7 = inlined_call_operand.vmem [shape: f32[4,1], index: 7, kind: input, shape index: {}]   ;;  %s5048_s3 = inlined_call_operand.vmem [shape: f32[20,96], index: 3, kind: input, shape index: {}]   ;;  %s5049_s4 = inlined_call_operand.vmem [shape: f32[2,20], index: 4, kind: input, shape index: {}]   ;;  %s5050_s6 = inlined_call_operand.vmem [shape: f32[4,16], index: 6, kind: input, shape index: {}]   ;;  %s5051_s8 = inlined_call_operand.vmem [shape: f32[4,128], index: 8, kind: output, shape index: {}]  }
   0x1   :  { %v134_v0 = vld [vmem:[%s5043_s0 + $0x58] sm:$0xff]  ;;  %v133_v1 = vld [vmem:[%s5043_s0 + $0x50] sm:$0xff]  ;;  %3884 = vset.pattern.permute.xlu0 %v3902_v2  ;;  %3885 = vset.pattern.permute.xlu1 %v3902_v2  ;;  %v132_v3 = vld [vmem:[%s5043_s0 + $0x48] sm:$0xff]  ;;  %vm405_vm2 = vcmask 1043456   ;;  %vm401_vm3 = vcmask 162816   ;;  %vm2639_vm4 = vcmask 130048  }
   0x2   :  { %3202 = vmatprep.subr.mxu0 %v134_v0  ;;  %v131_v4 = vld [vmem:[%s5043_s0 + $0x40] sm:$0xff]  ;;  %v130_v6 = vld [vmem:[%s5043_s0 + $0x38] sm:$0xff]  ;;  %v129_v7 = vld [vmem:[%s5043_s0 + $0x30] sm:$0xff]  ;;  %3244 = vmatprep.subr.mxu1 %v3903_v51 }
   0x3   :  { %3203 = vmatpush3.msra.mxu0 %v134_v0  ;;  %v3965_v5 = vld [vmem:[%s5044_s1] sm:$0xff]  ;;  %v128_v8 = vld [vmem:[%s5043_s0 + $0x28] sm:$0xff]  ;;  %v56_v10 = vld [vmem:[%s5045_s2 + $0x58] sm:$0xff]  ;;  %3268 = vmatprep.mubr.msk.f32.mxu1 %vm3904_vm1, %v3903_v51 }
   0x4   :  { %3204 = vmatprep.subr.mxu0 %v133_v1  ;;  %3226 = vmatprep.mubr.msk.f32.mxu0 %vm135_vm0, %v3965_v5  ;;  %v127_v9 = vld [vmem:[%s5043_s0 + $0x20] sm:$0xff]  ;;  %v54_v11 = vld [vmem:[%s5045_s2 + $0x48] sm:$0xff]  ;;  %v126_v12 = vld [vmem:[%s5043_s0 + $0x18] sm:$0xff] }
   0x5   :  { %3205 = vmatpush3.msra.mxu0 %v133_v1  ;;  %114 = vperm.xlu0 %3884, %v56_v10   ;;  %v55_v13 = vld [vmem:[%s5045_s2 + $0x50] sm:$0xff]  ;;  %v53_v14 = vld [vmem:[%s5045_s2 + $0x40] sm:$0xff]  ;;  %v124_v16 = vld [vmem:[%s5043_s0 + $0x8] sm:$0xff] }
   0x6   :  { %3206 = vmatprep.subr.mxu0 %v132_v3  ;;  %104 = vperm.xlu1 %3885, %v54_v11   ;;  %v125_v15 = vld [vmem:[%s5043_s0 + $0x10] sm:$0xff]  ;;  %v52_v17 = vld [vmem:[%s5045_s2 + $0x38] sm:$0xff]  ;;  %v123_v19 = vld [vmem:[%s5043_s0] sm:$0xff] }
   0x7   :  { %3207 = vmatpush3.msra.mxu0 %v132_v3  ;;  %v51_v18 = vld [vmem:[%s5045_s2 + $0x30] sm:$0xff]  ;;  %v4014_v20 = vld [vmem:[%s5044_s1 + $0x8] sm:$0xff]  ;;  %v492_v21 = vld [vmem:[%s5043_s0 + $0xb8] sm:$0xff] }
   0x8   :  { %3208 = vmatprep.subr.mxu0 %v131_v4  ;;  %v4022_v22 = vld [vmem:[%s5044_s1 + $0x10] sm:$0xff]  ;;  %v50_v24 = vld [vmem:[%s5045_s2 + $0x28] sm:$0xff]  ;;  %v49_v25 = vld [vmem:[%s5045_s2 + $0x20] sm:$0xff] }
   0x9   :  { %3209 = vmatpush3.msra.mxu0 %v131_v4  ;;  %109 = vperm.xlu0 %3884, %v55_v13   ;;  %v491_v23 = vld [vmem:[%s5043_s0 + $0xb0] sm:$0xff]  ;;  %v4040_v26 = vld [vmem:[%s5044_s1 + $0x18] sm:$0xff]  ;;  %v490_v27 = vld [vmem:[%s5043_s0 + $0xa8] sm:$0xff] }
   0xa   :  { %3210 = vmatprep.subr.mxu0 %v130_v6  ;;  %99 = vperm.xlu1 %3885, %v53_v14   ;;  %v4048_v28 = vld [vmem:[%s5044_s1 + $0x20] sm:$0xff]  ;;  %v48_v30 = vld [vmem:[%s5045_s2 + $0x18] sm:$0xff]  ;;  %v47_v31 = vld [vmem:[%s5045_s2 + $0x10] sm:$0xff] }
   0xb   :  { %3211 = vmatpush3.msra.mxu0 %v130_v6  ;;  %v489_v29 = vld [vmem:[%s5043_s0 + $0xa0] sm:$0xff]  ;;  %v4066_v32 = vld [vmem:[%s5044_s1 + $0x28] sm:$0xff]  ;;  %v488_v33 = vld [vmem:[%s5043_s0 + $0x98] sm:$0xff] }
   0xc   :  { %3212 = vmatprep.subr.mxu0 %v129_v7  ;;  %v4074_v34 = vld [vmem:[%s5044_s1 + $0x30] sm:$0xff]  ;;  %v46_v36 = vld [vmem:[%s5045_s2 + $0x8] sm:$0xff]  ;;  %v45_v37 = vld [vmem:[%s5045_s2] sm:$0xff] }
   0xd   :  { %3213 = vmatpush3.msra.mxu0 %v129_v7  ;;  %94 = vperm.xlu0 %3884, %v52_v17   ;;  %v487_v35 = vld [vmem:[%s5043_s0 + $0x90] sm:$0xff]  ;;  %v4092_v38 = vld [vmem:[%s5044_s1 + $0x38] sm:$0xff]  ;;  %v486_v39 = vld [vmem:[%s5043_s0 + $0x88] sm:$0xff] }
   0xe   :  { %3214 = vmatprep.subr.mxu0 %v128_v8  ;;  %89 = vperm.xlu1 %3885, %v51_v18   ;;  %v4100_v40 = vld [vmem:[%s5044_s1 + $0x40] sm:$0xff]  ;;  %v4118_v44 = vld [vmem:[%s5044_s1 + $0x48] sm:$0xff]  ;;  %v484_v45 = vld [vmem:[%s5043_s0 + $0x78] sm:$0xff] }
   0xf   :  { %3215 = vmatpush3.msra.mxu0 %v128_v8  ;;  %v485_v41 = vld [vmem:[%s5043_s0 + $0x80] sm:$0xff]  ;;  %v4126_v46 = vld [vmem:[%s5044_s1 + $0x50] sm:$0xff]  ;;  %v4138_v48 = vld [vmem:[%s5044_s1 + $0x58] sm:$0xff] }
  0x10   :  { %3216 = vmatprep.subr.mxu0 %v127_v9  ;;  %v117_v42 = vld [vmem:[%s5046_s5] sm:$0x3]  ;;  %v483_v47 = vld [vmem:[%s5043_s0 + $0x70] sm:$0xff]  ;;  %v482_v49 = vld [vmem:[%s5043_s0 + $0x68] sm:$0xff] }
  0x11   :  { %3217 = vmatpush3.msra.mxu0 %v127_v9  ;;  %84 = vperm.xlu0 %3884, %v50_v24   ;;  %v2633_v43 = vld [vmem:[%s5047_s7] sm:$0xf] }
  0x12   :  { %3218 = vmatprep.subr.mxu0 %v126_v12  ;;  %79 = vperm.xlu1 %3885, %v49_v25   ;;  %v481_v50 = vld [vmem:[%s5043_s0 + $0x60] sm:$0xff] }
  0x13   :  { %3219 = vmatpush3.msra.mxu0 %v126_v12 }
  0x14   :  { %3220 = vmatprep.subr.mxu0 %v125_v15 }
  0x15   :  { %3221 = vmatpush3.msra.mxu0 %v125_v15  ;;  %74 = vperm.xlu0 %3884, %v48_v30  }
  0x16   :  { %3222 = vmatprep.subr.mxu0 %v124_v16  ;;  %69 = vperm.xlu1 %3885, %v47_v31  }
  0x17   :  { %3223 = vmatpush3.msra.mxu0 %v124_v16 }
  0x18   :  { %3224 = vmatprep.subr.mxu0 %v123_v19 }
  0x19   :  { %3225 = vmatpush3.msra.mxu0 %v123_v19  ;;  %64 = vperm.xlu0 %3884, %v46_v36  }
  0x1a   :  { %3227 = vmatmul.mubr.msk.f32.vlgmr.msra.gmra.mxu0 %vm135_vm0, %v4014_v20  ;;  %3286 = vmatprep.subr.mxu0 %v492_v21 }
  0x1b   :  { %3287 = vmatpush3.msra.mxu0 %v492_v21  ;;  %3229 = vmatprep.mubr.msk.f32.mxu0 %vm135_vm0, %v4022_v22 }
  0x1c   :  { %3288 = vmatprep.subr.mxu0 %v491_v23  ;;  %59 = vperm.xlu1 %3885, %v45_v37  }
  0x1d   :  { %3289 = vmatpush3.msra.mxu0 %v491_v23  ;;  %120 = vperm.xlu0 %3884, %v117_v42  }
  0x1e   :  { %3230 = vmatmul.mubr.msk.f32.gmra.mxu0 %vm135_vm0, %v4040_v26  ;;  %3290 = vmatprep.subr.mxu0 %v490_v27 }
  0x1f   :  { %3291 = vmatpush3.msra.mxu0 %v490_v27  ;;  %3232 = vmatprep.mubr.msk.f32.mxu0 %vm135_vm0, %v4048_v28 }
  0x20   :  { %3292 = vmatprep.subr.mxu0 %v489_v29  ;;  %2636 = vperm.xlu1 %3885, %v2633_v43  }
  0x21   :  { %3293 = vmatpush3.msra.mxu0 %v489_v29 }
  0x22   :  { %3233 = vmatmul.mubr.msk.f32.gmra.mxu0 %vm135_vm0, %v4066_v32  ;;  %3294 = vmatprep.subr.mxu0 %v488_v33 }
  0x23   :  { %3295 = vmatpush3.msra.mxu0 %v488_v33  ;;  %3235 = vmatprep.mubr.msk.f32.mxu0 %vm135_vm0, %v4074_v34 }
  0x24   :  { %3296 = vmatprep.subr.mxu0 %v487_v35 }
  0x25   :  { %3297 = vmatpush3.msra.mxu0 %v487_v35 }
  0x26   :  { %3236 = vmatmul.mubr.msk.f32.gmra.mxu0 %vm135_vm0, %v4092_v38  ;;  %3298 = vmatprep.subr.mxu0 %v486_v39 }
  0x27   :  { %3299 = vmatpush3.msra.mxu0 %v486_v39  ;;  %3238 = vmatprep.mubr.msk.f32.mxu0 %vm135_vm0, %v4100_v40 }
  0x28   :  { %3300 = vmatprep.subr.mxu0 %v485_v41 }
  0x29   :  { %3301 = vmatpush3.msra.mxu0 %v485_v41 }
  0x2a   :  { %3239 = vmatmul.mubr.msk.f32.gmra.mxu0 %vm135_vm0, %v4118_v44  ;;  %3302 = vmatprep.subr.mxu0 %v484_v45 }
  0x2b   :  { %3303 = vmatpush3.msra.mxu0 %v484_v45  ;;  %3241 = vmatprep.mubr.msk.f32.mxu0 %vm135_vm0, %v4126_v46 }
  0x2c   :  { %3304 = vmatprep.subr.mxu0 %v483_v47 }
  0x2d   :  { %3305 = vmatpush3.msra.mxu0 %v483_v47  ;;  %v4227_v47 = vld [vmem:[%s5048_s3] sm:$0xff] }
  0x2e   :  { %3242 = vmatmul.mubr.msk.f32.gmra.mxu0 %vm135_vm0, %v4138_v48  ;;  %3306 = vmatprep.subr.mxu0 %v482_v49 }
  0x2f   :  { %3307 = vmatpush3.msra.mxu0 %v482_v49  ;;  %3310 = vmatprep.mubr.msk.f32.mxu0 %vm135_vm0, %v3965_v5  ;;  %v4238_v49 = vld [vmem:[%s5048_s3 + $0x8] sm:$0xff] }
  0x30   :  { %3308 = vmatprep.subr.mxu0 %v481_v50 }
  0x31   :  { %3309 = vmatpush3.msra.mxu0 %v481_v50  ;;  %v4247_v50 = vld [vmem:[%s5048_s3 + $0x10] sm:$0xf] }
  0x32   :  { %3311 = vmatmul.mubr.msk.f32.vlgmr.msra.gmra.mxu0 %vm135_vm0, %v4014_v20  ;;  %3361 = vmatprep.subr.mxu0 %v3903_v51 }
  0x33   :  { %3313 = vmatprep.mubr.msk.f32.mxu0 %vm135_vm0, %v4022_v22 }
  0x36   :  { %3314 = vmatmul.mubr.msk.f32.gmra.mxu0 %vm135_vm0, %v4040_v26 }
  0x37   :  { %3316 = vmatprep.mubr.msk.f32.mxu0 %vm135_vm0, %v4048_v28 }
  0x3a   :  { %3317 = vmatmul.mubr.msk.f32.gmra.mxu0 %vm135_vm0, %v4066_v32 }
  0x3b   :  { %3319 = vmatprep.mubr.msk.f32.mxu0 %vm135_vm0, %v4074_v34 }
  0x3e   :  { %3320 = vmatmul.mubr.msk.f32.gmra.mxu0 %vm135_vm0, %v4092_v38 }
  0x3f   :  { %3322 = vmatprep.mubr.msk.f32.mxu0 %vm135_vm0, %v4100_v40 }
  0x42   :  { %3323 = vmatmul.mubr.msk.f32.gmra.mxu0 %vm135_vm0, %v4118_v44 }
  0x43   :  { %3325 = vmatprep.mubr.msk.f32.mxu0 %vm135_vm0, %v4126_v46 }
  0x46   :  { %3326 = vmatmul.mubr.msk.f32.gmra.mxu0 %vm135_vm0, %v4138_v48 }
  0x47   :  { %3367 = vmatprep.mubr.msk.f32.mxu0 %vm3904_vm1, %v3903_v51 }
  0x80   :  { %v4178_v55 = vpop.permute.xlu0 %114 }
  0x81   :  { %v4180_v57 = vpop.permute.xlu1 %104 }
  0x84   :  { %v4182_v60 = vpop.permute.xlu0 %109 }
  0x85   :  { %v4184_v62 = vpop.permute.xlu1 %99 }
  0x88   :  { %v4186_v1 = vpop.permute.xlu0 %94 }
  0x89   :  { %v4188_v3 = vpop.permute.xlu1 %89 }
  0x8c   :  { %v4193_v11 = vpop.permute.xlu0 %84 }
  0x8d   :  { %v4196_v14 = vpop.permute.xlu1 %79 }
  0x90   :  { %v4202_v19 = vpop.permute.xlu0 %74 }
  0x91   :  { %v4206_v24 = vpop.permute.xlu1 %69 }
  0x94   :  { %v4212_v31 = vpop.permute.xlu0 %64 }
  0x97   :  { %v4216_v36 = vpop.permute.xlu1 %59 }
  0xda   :  { %v3228_v52 = vpop.f32.mrf.mxu0 }
  0xdb   :  { %v244_v37 = vadd.f32 %v3228_v52, %v4212_v31 }
  0xdc   :  { %v238_v53 = vpop.f32.mrf.mxu0 }
  0xdd   :  { %v239_v41 = vadd.f32 %v238_v53, %v4216_v36  ;;  %v298_v43 = vmax.f32 %v244_v37, 0.0 }
  0xde   :  { %v3231_v54 = vpop.f32.mrf.mxu0 }
  0xdf   :  { %v254_v29 = vadd.f32 %v3231_v54, %v4202_v19  ;;  %v297_v45 = vmax.f32 %v239_v41, 0.0 }
  0xe0   :  { %v248_v56 = vpop.f32.mrf.mxu0 }
  0xe1   :  { %v249_v33 = vadd.f32 %v248_v56, %v4206_v24  ;;  %v300_v39 = vmax.f32 %v254_v29, 0.0 }
  0xe2   :  { %v3234_v58 = vpop.f32.mrf.mxu0 }
  0xe3   :  { %v264_v21 = vadd.f32 %v3234_v58, %v4193_v11  ;;  %v299_v42 = vmax.f32 %v249_v33, 0.0 }
  0xe4   :  { %v258_v59 = vpop.f32.mrf.mxu0 }
  0xe5   :  { %v259_v25 = vadd.f32 %v258_v59, %v4196_v14  ;;  %v302_v30 = vmax.f32 %v264_v21, 0.0 }
  0xe6   :  { %v3237_v61 = vpop.f32.mrf.mxu0 }
  0xe7   :  { %v274_v15 = vadd.f32 %v3237_v61, %v4186_v1  ;;  %v301_v35 = vmax.f32 %v259_v25, 0.0 }
  0xe8   :  { %v268_v63 = vpop.f32.mrf.mxu0 }
  0xe9   :  { %v269_v17 = vadd.f32 %v268_v63, %v4188_v3  ;;  %v304_v23 = vmax.f32 %v274_v15, 0.0 }
  0xea   :  { %v3240_v0 = vpop.f32.mrf.mxu0 }
  0xeb   :  { %v284_v8 = vadd.f32 %v3240_v0, %v4180_v57  ;;  %v303_v27 = vmax.f32 %v269_v17, 0.0 }
  0xec   :  { %v278_v2 = vpop.f32.mrf.mxu0 }
  0xed   :  { %v279_v12 = vadd.f32 %v278_v2, %v4184_v62  ;;  %v306_v16 = vmax.f32 %v284_v8, 0.0 }
  0xee   :  { %v3243_v4 = vpop.f32.mrf.mxu0 }
  0xef   :  { %v294_v6 = vadd.f32 %v3243_v4, %v4178_v55  ;;  %v305_v18 = vmax.f32 %v279_v12, 0.0 }
  0xf0   :  { %v288_v7 = vpop.f32.mrf.mxu0 }
  0xf1   :  { %v308_v9 = vmax.f32 %v294_v6, 0.0  ;;  %v289_v10 = vadd.f32 %v288_v7, %v4182_v60 }
  0xf2   :  { %v4253_v52 = vpop.f32.mrf.mxu0 }
  0xf3   :  { %v307_v13 = vmax.f32 %v289_v10, 0.0  ;;  %3245 = vmatpush3.msra.mxu1 %v308_v9 }
  0xf4   :  { %3246 = vmatprep.subr.mxu1 %v3903_v51  ;;  %v4255_v53 = vpop.f32.mrf.mxu0 }
  0xf5   :  { %3247 = vmatpush3.msra.mxu1 %v307_v13 }
  0xf6   :  { %3248 = vmatprep.subr.mxu1 %v3903_v51  ;;  %v3315_v54 = vpop.f32.mrf.mxu0 }
  0xf7   :  { %3249 = vmatpush3.msra.mxu1 %v306_v16 }
  0xf8   :  { %3250 = vmatprep.subr.mxu1 %v3903_v51  ;;  %v569_v56 = vpop.f32.mrf.mxu0 }
  0xf9   :  { %3251 = vmatpush3.msra.mxu1 %v305_v18 }
  0xfa   :  { %3252 = vmatprep.subr.mxu1 %v3903_v51  ;;  %v3318_v58 = vpop.f32.mrf.mxu0 }
  0xfb   :  { %3253 = vmatpush3.msra.mxu1 %v304_v23  ;;  %v4264_v23 = vld [vmem:[%s5049_s4] sm:$0x3]  ;;  %v585_v41 = vadd.f32 %v3318_v58, %v4193_v11  ;;  %v565_v58 = vadd.f32 %v4253_v52, %v4212_v31  ;;  %v799_v52 = vld [vmem:[%s5043_s0 + $0x118] sm:$0xff] }
  0xfc   :  { %3254 = vmatprep.subr.mxu1 %v3903_v51  ;;  %v579_v59 = vpop.f32.mrf.mxu0 }
  0xfd   :  { %3255 = vmatpush3.msra.mxu1 %v303_v27 }
  0xfe   :  { %3256 = vmatprep.subr.mxu1 %v3903_v51  ;;  %v3321_v61 = vpop.f32.mrf.mxu0 }
  0xff   :  { %3257 = vmatpush3.msra.mxu1 %v302_v30  ;;  %v595_v33 = vadd.f32 %v3321_v61, %v4186_v1  ;;  %v575_v61 = vadd.f32 %v3315_v54, %v4202_v19  ;;  %v560_v54 = vadd.f32 %v4255_v53, %v4216_v36  ;;  %v798_v53 = vld [vmem:[%s5043_s0 + $0x110] sm:$0xff] }
 0x100   :  { %3258 = vmatprep.subr.mxu1 %v3903_v51  ;;  %v589_v63 = vpop.f32.mrf.mxu0 }
 0x101   :  { %3259 = vmatpush3.msra.mxu1 %v301_v35  ;;  %v590_v37 = vadd.f32 %v589_v63, %v4188_v3  ;;  %v570_v63 = vadd.f32 %v569_v56, %v4206_v24  ;;  %v618_v56 = vmax.f32 %v560_v54, 0.0 }
 0x102   :  { %3260 = vmatprep.subr.mxu1 %v3903_v51  ;;  %v3324_v0 = vpop.f32.mrf.mxu0 }
 0x103   :  { %3261 = vmatpush3.msra.mxu1 %v300_v39  ;;  %v605_v25 = vadd.f32 %v3324_v0, %v4180_v57  ;;  %v623_v0 = vmax.f32 %v585_v41, 0.0  ;;  %v1097_v41 = vld [vmem:[%s5043_s0 + $0x130] sm:$0xff] }
 0x104   :  { %3262 = vmatprep.subr.mxu1 %v3903_v51  ;;  %v599_v4 = vpop.f32.mrf.mxu0 }
 0x105   :  { %3263 = vmatpush3.msra.mxu1 %v299_v42  ;;  %v600_v29 = vadd.f32 %v599_v4, %v4184_v62  ;;  %v627_v35 = vmax.f32 %v605_v25, 0.0  ;;  %v625_v42 = vmax.f32 %v595_v33, 0.0  ;;  %v620_v4 = vmax.f32 %v570_v63, 0.0  ;;  %v1105_v25 = vld [vmem:[%s5043_s0 + $0x170] sm:$0xff] }
 0x106   :  { %3264 = vmatprep.subr.mxu1 %v3903_v51  ;;  %v3327_v8 = vpop.f32.mrf.mxu0  ;;  %v1101_v33 = vld [vmem:[%s5043_s0 + $0x150] sm:$0xff] }
 0x107   :  { %3265 = vmatpush3.msra.mxu1 %v298_v43  ;;  %v615_v16 = vadd.f32 %v3327_v8, %v4178_v55  ;;  %v626_v39 = vmax.f32 %v600_v29, 0.0  ;;  %v580_v43 = vadd.f32 %v579_v59, %v4196_v14  ;;  %v621_v59 = vmax.f32 %v575_v61, 0.0  ;;  %v796_v8 = vld [vmem:[%s5043_s0 + $0x100] sm:$0xff] }
 0x108   :  { %3266 = vmatprep.subr.mxu1 %v3903_v51  ;;  %v609_v13 = vpop.f32.mrf.mxu0  ;;  %v1103_v29 = vld [vmem:[%s5043_s0 + $0x160] sm:$0xff] }
 0x109   :  { %3267 = vmatpush3.msra.mxu1 %v297_v45  ;;  %v610_v18 = vadd.f32 %v609_v13, %v4182_v60  ;;  %v629_v27 = vmax.f32 %v615_v16, 0.0  ;;  %v624_v45 = vmax.f32 %v590_v37, 0.0  ;;  %v792_v13 = vld [vmem:[%s5043_s0 + $0xe0] sm:$0xff]  ;;  %v790_v16 = vld [vmem:[%s5043_s0 + $0xd0] sm:$0xff] }
 0x10a   :  { %3269 = vmatmul.mubr.msk.f32.vlgmr.msra.gmra.mxu1 %vm135_vm0, %v4227_v47  ;;  %3277 = vmatprep.subr.mxu1 %v3903_v51  ;;  %v1099_v37 = vld [vmem:[%s5043_s0 + $0x140] sm:$0xff] }
 0x10b   :  { %3271 = vmatprep.mubr.msk.f32.mxu1 %vm3904_vm1, %v3903_v51  ;;  %v628_v30 = vmax.f32 %v610_v18, 0.0  ;;  %v788_v18 = vld [vmem:[%s5043_s0 + $0xc0] sm:$0xff] }
 0x10e   :  { %3272 = vmatmul.mubr.msk.f32.gmra.mxu1 %vm135_vm0, %v4238_v49 }
 0x10f   :  { %3274 = vmatprep.mubr.msk.f32.mxu1 %vm3904_vm1, %v3903_v51 }
 0x112   :  { %3275 = vmatmul.mubr.msk.f32.gmra.mxu1 %vm135_vm0, %v4247_v50 }
 0x113   :  { %3283 = vmatprep.mubr.msk.f32.mxu1 %vm3904_vm1, %v3903_v51 }
 0x1ca   :  { %v384_v2 = vpop.f32.mrf.mxu1 }
 0x1cb   :  { %v398_v21 = vmax.f32 %v384_v2, 0.0  ;;  %v622_v2 = vmax.f32 %v580_v43, 0.0  ;;  %v1095_v43 = vld [vmem:[%s5043_s0 + $0x120] sm:$0xff] }
 0x1cc   :  { %v3270_v6 = vpop.f32.mrf.mxu1 }
 0x1cd   :  { %v619_v6 = vmax.f32 %v565_v58, 0.0 }
 0x1ce   :  { %v389_v7 = vpop.f32.mrf.mxu1 }
 0x1cf   :  { %v399_v17 = vmax.f32 %v389_v7, 0.0  ;;  %v797_v7 = vld [vmem:[%s5043_s0 + $0x108] sm:$0xff] }
 0x1d0   :  { %v3273_v9 = vpop.f32.mrf.mxu1 }
 0x1d1   :  { %v795_v9 = vld [vmem:[%s5043_s0 + $0xf8] sm:$0xff] }
 0x1d2   :  { %v394_v10 = vpop.f32.mrf.mxu1 }
 0x1d3   :  { %v400_v12 = vmax.f32 %v394_v10, 0.0  ;;  %v794_v10 = vld [vmem:[%s5043_s0 + $0xf0] sm:$0xff] }
 0x1d4   :  { %v3276_v15 = vpop.f32.mrf.mxu1 }
 0x1d5   :  { %3278 = vmatpush3.msk.msra.mxu1 %vm405_vm2, %v400_v12  ;;  %v793_v12 = vld [vmem:[%s5043_s0 + $0xe8] sm:$0xff]  ;;  %v791_v15 = vld [vmem:[%s5043_s0 + $0xd8] sm:$0xff] }
 0x1d6   :  { %3279 = vmatprep.subr.mxu1 %v3903_v51 }
 0x1d7   :  { %3280 = vmatpush3.msra.mxu1 %v399_v17  ;;  %v789_v17 = vld [vmem:[%s5043_s0 + $0xc8] sm:$0xff] }
 0x1d8   :  { %3281 = vmatprep.subr.mxu1 %v3903_v51 }
 0x1d9   :  { %3282 = vmatpush3.msra.mxu1 %v398_v21  ;;  %v1106_v21 = vld [vmem:[%s5043_s0 + $0x178] sm:$0xff] }
 0x1da   :  { %3284 = vmatmul.mubr.msk.f32.vlgmr.msra.gmra.mxu1 %vm401_vm3, %v4264_v23  ;;  %3328 = vmatprep.subr.mxu1 %v3903_v51 }
 0x1db   :  { %3329 = vmatpush3.msra.mxu1 %v629_v27  ;;  %3352 = vmatprep.mubr.msk.f32.mxu1 %vm3904_vm1, %v3903_v51  ;;  %v1104_v27 = vld [vmem:[%s5043_s0 + $0x168] sm:$0xff] }
 0x1dc   :  { %3330 = vmatprep.subr.mxu1 %v3903_v51 }
 0x1dd   :  { %3331 = vmatpush3.msra.mxu1 %v628_v30  ;;  %v1102_v30 = vld [vmem:[%s5043_s0 + $0x158] sm:$0xff] }
 0x1de   :  { %3332 = vmatprep.subr.mxu1 %v3903_v51 }
 0x1df   :  { %3333 = vmatpush3.msra.mxu1 %v627_v35  ;;  %v1100_v35 = vld [vmem:[%s5043_s0 + $0x148] sm:$0xff] }
 0x1e0   :  { %3334 = vmatprep.subr.mxu1 %v3903_v51 }
 0x1e1   :  { %3335 = vmatpush3.msra.mxu1 %v626_v39  ;;  %v1098_v39 = vld [vmem:[%s5043_s0 + $0x138] sm:$0xff] }
 0x1e2   :  { %3336 = vmatprep.subr.mxu1 %v3903_v51 }
 0x1e3   :  { %3337 = vmatpush3.msra.mxu1 %v625_v42  ;;  %v1096_v42 = vld [vmem:[%s5043_s0 + $0x128] sm:$0xff] }
 0x1e4   :  { %3338 = vmatprep.subr.mxu1 %v3903_v51 }
 0x1e5   :  { %3339 = vmatpush3.msra.mxu1 %v624_v45 }
 0x1e6   :  { %3340 = vmatprep.subr.mxu1 %v3903_v51 }
 0x1e7   :  { %3341 = vmatpush3.msra.mxu1 %v623_v0 }
 0x1e8   :  { %3342 = vmatprep.subr.mxu1 %v3903_v51 }
 0x1e9   :  { %3343 = vmatpush3.msra.mxu1 %v622_v2 }
 0x1ea   :  { %3344 = vmatprep.subr.mxu1 %v3903_v51 }
 0x1eb   :  { %3345 = vmatpush3.msra.mxu1 %v621_v59 }
 0x1ec   :  { %3346 = vmatprep.subr.mxu1 %v3903_v51 }
 0x1ed   :  { %3347 = vmatpush3.msra.mxu1 %v620_v4 }
 0x1ee   :  { %3348 = vmatprep.subr.mxu1 %v3903_v51 }
 0x1ef   :  { %3349 = vmatpush3.msra.mxu1 %v619_v6 }
 0x1f0   :  { %3350 = vmatprep.subr.mxu1 %v3903_v51 }
 0x1f1   :  { %3351 = vmatpush3.msra.mxu1 %v618_v56 }
 0x1f2   :  { %3353 = vmatmul.mubr.msk.f32.vlgmr.msra.gmra.mxu1 %vm135_vm0, %v4227_v47  ;;  %3370 = vmatprep.subr.mxu1 %v799_v52 }
 0x1f3   :  { %3371 = vmatpush3.msra.mxu1 %v799_v52  ;;  %3355 = vmatprep.mubr.msk.f32.mxu1 %vm3904_vm1, %v3903_v51 }
 0x1f4   :  { %3372 = vmatprep.subr.mxu1 %v798_v53 }
 0x1f5   :  { %3373 = vmatpush3.msra.mxu1 %v798_v53 }
 0x1f6   :  { %3356 = vmatmul.mubr.msk.f32.gmra.mxu1 %vm135_vm0, %v4238_v49  ;;  %3374 = vmatprep.subr.mxu1 %v797_v7 }
 0x1f7   :  { %3375 = vmatpush3.msra.mxu1 %v797_v7  ;;  %3358 = vmatprep.mubr.msk.f32.mxu1 %vm3904_vm1, %v3903_v51 }
 0x1f8   :  { %3376 = vmatprep.subr.mxu1 %v796_v8 }
 0x1f9   :  { %3377 = vmatpush3.msra.mxu1 %v796_v8 }
 0x1fa   :  { %3359 = vmatmul.mubr.msk.f32.gmra.mxu1 %vm135_vm0, %v4247_v50  ;;  %3378 = vmatprep.subr.mxu1 %v795_v9 }
 0x1fb   :  { %3379 = vmatpush3.msra.mxu1 %v795_v9  ;;  %3394 = vmatprep.mubr.msk.f32.mxu1 %vm135_vm0, %v3965_v5 }
 0x1fc   :  { %3380 = vmatprep.subr.mxu1 %v794_v10 }
 0x1fd   :  { %3381 = vmatpush3.msra.mxu1 %v794_v10 }
 0x1fe   :  { %3382 = vmatprep.subr.mxu1 %v793_v12 }
 0x1ff   :  { %3383 = vmatpush3.msra.mxu1 %v793_v12 }
 0x200   :  { %3384 = vmatprep.subr.mxu1 %v792_v13 }
 0x201   :  { %3385 = vmatpush3.msra.mxu1 %v792_v13 }
 0x202   :  { %3386 = vmatprep.subr.mxu1 %v791_v15 }
 0x203   :  { %3387 = vmatpush3.msra.mxu1 %v791_v15 }
 0x204   :  { %3388 = vmatprep.subr.mxu1 %v790_v16 }
 0x205   :  { %3389 = vmatpush3.msra.mxu1 %v790_v16 }
 0x206   :  { %3390 = vmatprep.subr.mxu1 %v789_v17 }
 0x207   :  { %3391 = vmatpush3.msra.mxu1 %v789_v17 }
 0x208   :  { %3392 = vmatprep.subr.mxu1 %v788_v18 }
 0x209   :  { %3393 = vmatpush3.msra.mxu1 %v788_v18 }
 0x20a   :  { %3395 = vmatmul.mubr.msk.f32.vlgmr.msra.gmra.mxu1 %vm135_vm0, %v4014_v20  ;;  %3454 = vmatprep.subr.mxu1 %v1106_v21 }
 0x20b   :  { %3455 = vmatpush3.msra.mxu1 %v1106_v21  ;;  %3397 = vmatprep.mubr.msk.f32.mxu1 %vm135_vm0, %v4022_v22 }
 0x20c   :  { %3456 = vmatprep.subr.mxu1 %v1105_v25 }
 0x20d   :  { %3457 = vmatpush3.msra.mxu1 %v1105_v25 }
 0x20e   :  { %3398 = vmatmul.mubr.msk.f32.gmra.mxu1 %vm135_vm0, %v4040_v26  ;;  %3458 = vmatprep.subr.mxu1 %v1104_v27 }
 0x20f   :  { %3459 = vmatpush3.msra.mxu1 %v1104_v27  ;;  %3400 = vmatprep.mubr.msk.f32.mxu1 %vm135_vm0, %v4048_v28 }
 0x210   :  { %3460 = vmatprep.subr.mxu1 %v1103_v29 }
 0x211   :  { %3461 = vmatpush3.msra.mxu1 %v1103_v29 }
 0x212   :  { %3401 = vmatmul.mubr.msk.f32.gmra.mxu1 %vm135_vm0, %v4066_v32  ;;  %3462 = vmatprep.subr.mxu1 %v1102_v30 }
 0x213   :  { %3463 = vmatpush3.msra.mxu1 %v1102_v30  ;;  %3403 = vmatprep.mubr.msk.f32.mxu1 %vm135_vm0, %v4074_v34 }
 0x214   :  { %3464 = vmatprep.subr.mxu1 %v1101_v33 }
 0x215   :  { %3465 = vmatpush3.msra.mxu1 %v1101_v33 }
 0x216   :  { %3404 = vmatmul.mubr.msk.f32.gmra.mxu1 %vm135_vm0, %v4092_v38  ;;  %3466 = vmatprep.subr.mxu1 %v1100_v35 }
 0x217   :  { %3467 = vmatpush3.msra.mxu1 %v1100_v35  ;;  %3406 = vmatprep.mubr.msk.f32.mxu1 %vm135_vm0, %v4100_v40 }
 0x218   :  { %3468 = vmatprep.subr.mxu1 %v1099_v37 }
 0x219   :  { %3469 = vmatpush3.msra.mxu1 %v1099_v37 }
 0x21a   :  { %3407 = vmatmul.mubr.msk.f32.gmra.mxu1 %vm135_vm0, %v4118_v44  ;;  %3470 = vmatprep.subr.mxu1 %v1098_v39 }
 0x21b   :  { %3471 = vmatpush3.msra.mxu1 %v1098_v39  ;;  %3409 = vmatprep.mubr.msk.f32.mxu1 %vm135_vm0, %v4126_v46 }
 0x21c   :  { %3472 = vmatprep.subr.mxu1 %v1097_v41 }
 0x21d   :  { %3473 = vmatpush3.msra.mxu1 %v1097_v41 }
 0x21e   :  { %3410 = vmatmul.mubr.msk.f32.gmra.mxu1 %vm135_vm0, %v4138_v48  ;;  %3474 = vmatprep.subr.mxu1 %v1096_v42 }
 0x21f   :  { %3475 = vmatpush3.msra.mxu1 %v1096_v42  ;;  %3478 = vmatprep.mubr.msk.f32.mxu1 %vm135_vm0, %v3965_v5  ;;  %v4428_v5 = vpop.permute.xlu0 %120 }
 0x220   :  { %3476 = vmatprep.subr.mxu1 %v1095_v43 }
 0x221   :  { %3477 = vmatpush3.msra.mxu1 %v1095_v43 }
 0x222   :  { %3479 = vmatmul.mubr.msk.f32.vlgmr.msra.gmra.mxu1 %vm135_vm0, %v4014_v20  ;;  %3529 = vmatprep.subr.mxu1 %v3903_v51 }
 0x223   :  { %3481 = vmatprep.mubr.msk.f32.mxu1 %vm135_vm0, %v4022_v22 }
 0x226   :  { %3482 = vmatmul.mubr.msk.f32.gmra.mxu1 %vm135_vm0, %v4040_v26 }
 0x227   :  { %3484 = vmatprep.mubr.msk.f32.mxu1 %vm135_vm0, %v4048_v28 }
 0x22a   :  { %3485 = vmatmul.mubr.msk.f32.gmra.mxu1 %vm135_vm0, %v4066_v32 }
 0x22b   :  { %3487 = vmatprep.mubr.msk.f32.mxu1 %vm135_vm0, %v4074_v34 }
 0x22e   :  { %3488 = vmatmul.mubr.msk.f32.gmra.mxu1 %vm135_vm0, %v4092_v38 }
 0x22f   :  { %3490 = vmatprep.mubr.msk.f32.mxu1 %vm135_vm0, %v4100_v40 }
 0x232   :  { %3491 = vmatmul.mubr.msk.f32.gmra.mxu1 %vm135_vm0, %v4118_v44 }
 0x233   :  { %3493 = vmatprep.mubr.msk.f32.mxu1 %vm135_vm0, %v4126_v46 }
 0x236   :  { %3494 = vmatmul.mubr.msk.f32.gmra.mxu1 %vm135_vm0, %v4138_v48 }
 0x237   :  { %3535 = vmatprep.mubr.msk.f32.mxu1 %vm3904_vm1, %v3903_v51 }
 0x29a   :  { %v475_v20 = vpop.f32.mrf.mxu1 }
 0x29b   :  { %v476_v22 = vadd.f32 %v475_v20, %v4428_v5 }
 0x29c   :  { %v3285_v26 = vpop.f32.mrf.mxu1 }
 0x29d   :  { %v479_v28 = vmax.f32 %v476_v22, 0.0 }
 0x29f   :  { %480 = vst [vmem:[#allocation2] sm:$0x3] %v479_v28 }
 0x2b2   :  { %v696_v32 = vpop.f32.mrf.mxu1 }
 0x2b3   :  { %v710_v48 = vmax.f32 %v696_v32, 0.0 }
 0x2b4   :  { %v3354_v34 = vpop.f32.mrf.mxu1 }
 0x2b6   :  { %v701_v38 = vpop.f32.mrf.mxu1 }
 0x2b7   :  { %v711_v46 = vmax.f32 %v701_v38, 0.0 }
 0x2b8   :  { %v3357_v40 = vpop.f32.mrf.mxu1 }
 0x2ba   :  { %v706_v44 = vpop.f32.mrf.mxu1 }
 0x2bb   :  { %v712_v45 = vmax.f32 %v706_v44, 0.0 }
 0x2bc   :  { %v3360_v61 = vpop.f32.mrf.mxu1 }
 0x2bd   :  { %3362 = vmatpush3.msk.msra.mxu0 %vm405_vm2, %v712_v45 }
 0x2be   :  { %3363 = vmatprep.subr.mxu0 %v3903_v51 }
 0x2bf   :  { %3364 = vmatpush3.msra.mxu0 %v711_v46 }
 0x2c0   :  { %3365 = vmatprep.subr.mxu0 %v3903_v51 }
 0x2c1   :  { %3366 = vmatpush3.msra.mxu0 %v710_v48 }
 0x2c2   :  { %3368 = vmatmul.mubr.msk.f32.vlgmr.msra.gmra.mxu0 %vm401_vm3, %v4264_v23  ;;  %3412 = vmatprep.subr.mxu0 %v3903_v51 }
 0x2c3   :  { %3436 = vmatprep.mubr.msk.f32.mxu0 %vm3904_vm1, %v3903_v51 }
 0x2ca   :  { %v3396_v0 = vpop.f32.mrf.mxu1 }
 0x2cb   :  { %v872_v41 = vadd.f32 %v3396_v0, %v4212_v31 }
 0x2cc   :  { %v866_v63 = vpop.f32.mrf.mxu1 }
 0x2cd   :  { %v867_v43 = vadd.f32 %v866_v63, %v4216_v36  ;;  %v926_v22 = vmax.f32 %v872_v41, 0.0 }
 0x2ce   :  { %v3399_v2 = vpop.f32.mrf.mxu1 }
 0x2cf   :  { %v882_v33 = vadd.f32 %v3399_v2, %v4202_v19  ;;  %v925_v26 = vmax.f32 %v867_v43, 0.0 }
 0x2d0   :  { %v876_v58 = vpop.f32.mrf.mxu1 }
 0x2d1   :  { %v877_v37 = vadd.f32 %v876_v58, %v4206_v24  ;;  %v928_v42 = vmax.f32 %v882_v33, 0.0 }
 0x2d2   :  { %v3402_v59 = vpop.f32.mrf.mxu1 }
 0x2d3   :  { %v892_v25 = vadd.f32 %v3402_v59, %v4193_v11  ;;  %v927_v20 = vmax.f32 %v877_v37, 0.0 }
 0x2d4   :  { %v886_v54 = vpop.f32.mrf.mxu1 }
 0x2d5   :  { %v887_v29 = vadd.f32 %v886_v54, %v4196_v14  ;;  %v930_v35 = vmax.f32 %v892_v25, 0.0 }
 0x2d6   :  { %v3405_v4 = vpop.f32.mrf.mxu1 }
 0x2d7   :  { %v902_v16 = vadd.f32 %v3405_v4, %v4186_v1  ;;  %v929_v39 = vmax.f32 %v887_v29, 0.0 }
 0x2d8   :  { %v896_v6 = vpop.f32.mrf.mxu1 }
 0x2d9   :  { %v897_v18 = vadd.f32 %v896_v6, %v4188_v3  ;;  %v932_v27 = vmax.f32 %v902_v16, 0.0 }
 0x2da   :  { %v3408_v56 = vpop.f32.mrf.mxu1 }
 0x2db   :  { %v912_v9 = vadd.f32 %v3408_v56, %v4180_v57  ;;  %v931_v30 = vmax.f32 %v897_v18, 0.0 }
 0x2dc   :  { %v906_v52 = vpop.f32.mrf.mxu1 }
 0x2dd   :  { %v907_v13 = vadd.f32 %v906_v52, %v4184_v62  ;;  %v934_v17 = vmax.f32 %v912_v9, 0.0 }
 0x2de   :  { %v3411_v53 = vpop.f32.mrf.mxu1 }
 0x2df   :  { %v922_v7 = vadd.f32 %v3411_v53, %v4178_v55  ;;  %v933_v21 = vmax.f32 %v907_v13, 0.0 }
 0x2e0   :  { %v916_v8 = vpop.f32.mrf.mxu1 }
 0x2e1   :  { %v936_v10 = vmax.f32 %v922_v7, 0.0  ;;  %v917_v12 = vadd.f32 %v916_v8, %v4182_v60 }
 0x2e2   :  { %v3480_v40 = vpop.f32.mrf.mxu1 }
 0x2e3   :  { %v935_v15 = vmax.f32 %v917_v12, 0.0  ;;  %3413 = vmatpush3.msra.mxu0 %v936_v10 }
 0x2e4   :  { %3414 = vmatprep.subr.mxu0 %v3903_v51  ;;  %v4476_v44 = vpop.f32.mrf.mxu1 }
 0x2e5   :  { %3415 = vmatpush3.msra.mxu0 %v935_v15 }
 0x2e6   :  { %3416 = vmatprep.subr.mxu0 %v3903_v51  ;;  %v3483_v46 = vpop.f32.mrf.mxu1 }
 0x2e7   :  { %3417 = vmatpush3.msra.mxu0 %v934_v17 }
 0x2e8   :  { %3418 = vmatprep.subr.mxu0 %v3903_v51  ;;  %v1183_v45 = vpop.f32.mrf.mxu1 }
 0x2e9   :  { %3419 = vmatpush3.msra.mxu0 %v933_v21 }
 0x2ea   :  { %3420 = vmatprep.subr.mxu0 %v3903_v51  ;;  %v3486_v61 = vpop.f32.mrf.mxu1 }
 0x2eb   :  { %3421 = vmatpush3.msra.mxu0 %v932_v27 }
 0x2ec   :  { %3422 = vmatprep.subr.mxu0 %v3903_v51  ;;  %v1193_v48 = vpop.f32.mrf.mxu1 }
 0x2ed   :  { %3423 = vmatpush3.msra.mxu0 %v931_v30  ;;  %v1199_v30 = vadd.f32 %v3486_v61, %v4193_v11  ;;  %v4544_v61 = vld [vmem:[%s5044_s1] sm:$0xff] }
 0x2ee   :  { %3424 = vmatprep.subr.mxu0 %v3903_v51  ;;  %v3489_v0 = vpop.f32.mrf.mxu1 }
 0x2ef   :  { %3425 = vmatpush3.msra.mxu0 %v930_v35  ;;  %v1209_v21 = vadd.f32 %v3489_v0, %v4186_v1  ;;  %v1194_v35 = vadd.f32 %v1193_v48, %v4196_v14  ;;  %v1237_v41 = vmax.f32 %v1199_v30, 0.0  ;;  %v1405_v48 = vld [vmem:[%s5043_s0 + $0x198] sm:$0xff]  ;;  %v1404_v0 = vld [vmem:[%s5043_s0 + $0x190] sm:$0xff] }
 0x2f0   :  { %3426 = vmatprep.subr.mxu0 %v3903_v51  ;;  %v1203_v63 = vpop.f32.mrf.mxu1  ;;  %v4672_v30 = vld [vmem:[%s5044_s1 + $0x58] sm:$0xff] }
 0x2f1   :  { %3427 = vmatpush3.msra.mxu0 %v929_v39  ;;  %v1204_v27 = vadd.f32 %v1203_v63, %v4188_v3  ;;  %v1239_v33 = vmax.f32 %v1209_v21, 0.0  ;;  %v1189_v39 = vadd.f32 %v3483_v46, %v4202_v19  ;;  %v1236_v43 = vmax.f32 %v1194_v35, 0.0  ;;  %v1410_v46 = vld [vmem:[%s5043_s0 + $0x1c0] sm:$0xff]  ;;  %v1403_v63 = vld [vmem:[%s5043_s0 + $0x188] sm:$0xff] }
 0x2f2   :  { %3428 = vmatprep.subr.mxu0 %v3903_v51  ;;  %v3492_v2 = vpop.f32.mrf.mxu1  ;;  %v4652_v21 = vld [vmem:[%s5044_s1 + $0x48] sm:$0xff] }
 0x2f3   :  { %3429 = vmatpush3.msra.mxu0 %v928_v42  ;;  %v1219_v15 = vadd.f32 %v3492_v2, %v4180_v57  ;;  %v1238_v37 = vmax.f32 %v1204_v27, 0.0  ;;  %v1184_v42 = vadd.f32 %v1183_v45, %v4206_v24  ;;  %v1408_v45 = vld [vmem:[%s5043_s0 + $0x1b0] sm:$0xff]  ;;  %v1402_v2 = vld [vmem:[%s5043_s0 + $0x180] sm:$0xff]  ;;  %v1710_v27 = vld [vmem:[%s5043_s0 + $0x1e8] sm:$0xff] }
 0x2f4   :  { %3430 = vmatprep.subr.mxu0 %v3903_v51  ;;  %v1213_v59 = vpop.f32.mrf.mxu1 }
 0x2f5   :  { %3431 = vmatpush3.msra.mxu0 %v927_v20  ;;  %v1214_v17 = vadd.f32 %v1213_v59, %v4184_v62  ;;  %v1241_v25 = vmax.f32 %v1219_v15, 0.0  ;;  %v1179_v20 = vadd.f32 %v3480_v40, %v4212_v31  ;;  %v1412_v40 = vld [vmem:[%s5043_s0 + $0x1d0] sm:$0xff]  ;;  %v4632_v15 = vld [vmem:[%s5044_s1 + $0x38] sm:$0xff] }
 0x2f6   :  { %3432 = vmatprep.subr.mxu0 %v3903_v51  ;;  %v3495_v6 = vpop.f32.mrf.mxu1  ;;  %v1719_v59 = vld [vmem:[%s5043_s0 + $0x230] sm:$0xff] }
 0x2f7   :  { %3433 = vmatpush3.msra.mxu0 %v926_v22  ;;  %v1229_v9 = vadd.f32 %v3495_v6, %v4178_v55  ;;  %v1240_v29 = vmax.f32 %v1214_v17, 0.0  ;;  %v1235_v22 = vmax.f32 %v1189_v39, 0.0  ;;  %v1718_v6 = vld [vmem:[%s5043_s0 + $0x228] sm:$0xff]  ;;  %v1712_v17 = vld [vmem:[%s5043_s0 + $0x1f8] sm:$0xff] }
 0x2f8   :  { %3434 = vmatprep.subr.mxu0 %v3903_v51  ;;  %v1223_v7 = vpop.f32.mrf.mxu1 }
 0x2f9   :  { %3435 = vmatpush3.msra.mxu0 %v925_v26  ;;  %v1224_v12 = vadd.f32 %v1223_v7, %v4182_v60  ;;  %v1243_v16 = vmax.f32 %v1229_v9, 0.0  ;;  %v1174_v26 = vadd.f32 %v4476_v44, %v4216_v36  ;;  %v1411_v44 = vld [vmem:[%s5043_s0 + $0x1c8] sm:$0xff]  ;;  %v1716_v7 = vld [vmem:[%s5043_s0 + $0x218] sm:$0xff] }
 0x2fa   :  { %3437 = vmatmul.mubr.msk.f32.vlgmr.msra.gmra.mxu0 %vm135_vm0, %v4227_v47  ;;  %3445 = vmatprep.subr.mxu0 %v3903_v51  ;;  %v4612_v9 = vld [vmem:[%s5044_s1 + $0x28] sm:$0xff] }
 0x2fb   :  { %3439 = vmatprep.mubr.msk.f32.mxu0 %vm3904_vm1, %v3903_v51  ;;  %v1242_v18 = vmax.f32 %v1224_v12, 0.0  ;;  %v1714_v12 = vld [vmem:[%s5043_s0 + $0x208] sm:$0xff] }
 0x2fe   :  { %3440 = vmatmul.mubr.msk.f32.gmra.mxu0 %vm135_vm0, %v4238_v49 }
 0x2ff   :  { %3442 = vmatprep.mubr.msk.f32.mxu0 %vm3904_vm1, %v3903_v51 }
 0x302   :  { %3443 = vmatmul.mubr.msk.f32.gmra.mxu0 %vm135_vm0, %v4247_v50 }
 0x303   :  { %3451 = vmatprep.mubr.msk.f32.mxu0 %vm3904_vm1, %v3903_v51 }
 0x382   :  { %v782_v28 = vpop.f32.mrf.mxu0 }
 0x383   :  { %v783_v32 = vadd.f32 %v782_v28, %v4428_v5  ;;  %v1234_v28 = vmax.f32 %v1184_v42, 0.0 }
 0x384   :  { %v3369_v34 = vpop.f32.mrf.mxu0 }
 0x385   :  { %v786_v38 = vmax.f32 %v783_v32, 0.0  ;;  %v1233_v32 = vmax.f32 %v1179_v20, 0.0  ;;  %v1232_v34 = vmax.f32 %v1174_v26, 0.0 }
 0x387   :  { %787 = vst [vmem:[#allocation2 + $0x2] sm:$0x3] %v786_v38  ;;  %v1413_v38 = vld [vmem:[%s5043_s0 + $0x1d8] sm:$0xff] }
 0x3ba   :  { %v1003_v58 = vpop.f32.mrf.mxu0 }
 0x3bb   :  { %v1017_v13 = vmax.f32 %v1003_v58, 0.0  ;;  %v1720_v58 = vld [vmem:[%s5043_s0 + $0x238] sm:$0xff] }
 0x3bc   :  { %v3438_v54 = vpop.f32.mrf.mxu0 }
 0x3bd   :  { %v4572_v54 = vld [vmem:[%s5044_s1 + $0x8] sm:$0xff] }
 0x3be   :  { %v1008_v4 = vpop.f32.mrf.mxu0 }
 0x3bf   :  { %v1018_v10 = vmax.f32 %v1008_v4, 0.0  ;;  %v4579_v4 = vld [vmem:[%s5044_s1 + $0x10] sm:$0xff] }
 0x3c0   :  { %v3441_v56 = vpop.f32.mrf.mxu0 }
 0x3c1   :  { %v1717_v56 = vld [vmem:[%s5043_s0 + $0x220] sm:$0xff] }
 0x3c2   :  { %v1013_v52 = vpop.f32.mrf.mxu0 }
 0x3c3   :  { %v1019_v53 = vmax.f32 %v1013_v52, 0.0  ;;  %v4592_v52 = vld [vmem:[%s5044_s1 + $0x18] sm:$0xff] }
 0x3c4   :  { %v3444_v8 = vpop.f32.mrf.mxu0 }
 0x3c5   :  { %3446 = vmatpush3.msk.msra.mxu0 %vm405_vm2, %v1019_v53  ;;  %v4599_v53 = vld [vmem:[%s5044_s1 + $0x20] sm:$0xff]  ;;  %v1715_v8 = vld [vmem:[%s5043_s0 + $0x210] sm:$0xff] }
 0x3c6   :  { %3447 = vmatprep.subr.mxu0 %v3903_v51 }
 0x3c7   :  { %3448 = vmatpush3.msra.mxu0 %v1018_v10  ;;  %v4619_v10 = vld [vmem:[%s5044_s1 + $0x30] sm:$0xff] }
 0x3c8   :  { %3449 = vmatprep.subr.mxu0 %v3903_v51 }
 0x3c9   :  { %3450 = vmatpush3.msra.mxu0 %v1017_v13  ;;  %v1713_v13 = vld [vmem:[%s5043_s0 + $0x200] sm:$0xff] }
 0x3ca   :  { %3452 = vmatmul.mubr.msk.f32.vlgmr.msra.gmra.mxu0 %vm401_vm3, %v4264_v23  ;;  %3496 = vmatprep.subr.mxu0 %v3903_v51 }
 0x3cb   :  { %3497 = vmatpush3.msra.mxu0 %v1243_v16  ;;  %3520 = vmatprep.mubr.msk.f32.mxu0 %vm3904_vm1, %v3903_v51  ;;  %v4639_v16 = vld [vmem:[%s5044_s1 + $0x40] sm:$0xff] }
 0x3cc   :  { %3498 = vmatprep.subr.mxu0 %v3903_v51 }
 0x3cd   :  { %3499 = vmatpush3.msra.mxu0 %v1242_v18  ;;  %v1711_v18 = vld [vmem:[%s5043_s0 + $0x1f0] sm:$0xff] }
 0x3ce   :  { %3500 = vmatprep.subr.mxu0 %v3903_v51 }
 0x3cf   :  { %3501 = vmatpush3.msra.mxu0 %v1241_v25  ;;  %v4659_v25 = vld [vmem:[%s5044_s1 + $0x50] sm:$0xff] }
 0x3d0   :  { %3502 = vmatprep.subr.mxu0 %v3903_v51 }
 0x3d1   :  { %3503 = vmatpush3.msra.mxu0 %v1240_v29  ;;  %v1709_v29 = vld [vmem:[%s5043_s0 + $0x1e0] sm:$0xff] }
 0x3d2   :  { %3504 = vmatprep.subr.mxu0 %v3903_v51 }
 0x3d3   :  { %3505 = vmatpush3.msra.mxu0 %v1239_v33 }
 0x3d4   :  { %3506 = vmatprep.subr.mxu0 %v3903_v51 }
 0x3d5   :  { %3507 = vmatpush3.msra.mxu0 %v1238_v37 }
 0x3d6   :  { %3508 = vmatprep.subr.mxu0 %v3903_v51 }
 0x3d7   :  { %3509 = vmatpush3.msra.mxu0 %v1237_v41 }
 0x3d8   :  { %3510 = vmatprep.subr.mxu0 %v3903_v51 }
 0x3d9   :  { %3511 = vmatpush3.msra.mxu0 %v1236_v43 }
 0x3da   :  { %3512 = vmatprep.subr.mxu0 %v3903_v51 }
 0x3db   :  { %3513 = vmatpush3.msra.mxu0 %v1235_v22 }
 0x3dc   :  { %3514 = vmatprep.subr.mxu0 %v3903_v51 }
 0x3dd   :  { %3515 = vmatpush3.msra.mxu0 %v1234_v28 }
 0x3de   :  { %3516 = vmatprep.subr.mxu0 %v3903_v51 }
 0x3df   :  { %3517 = vmatpush3.msra.mxu0 %v1233_v32 }
 0x3e0   :  { %3518 = vmatprep.subr.mxu0 %v3903_v51 }
 0x3e1   :  { %3519 = vmatpush3.msra.mxu0 %v1232_v34 }
 0x3e2   :  { %3521 = vmatmul.mubr.msk.f32.vlgmr.msra.gmra.mxu0 %vm135_vm0, %v4227_v47  ;;  %3538 = vmatprep.subr.mxu0 %v1413_v38  ;;  %v1409_v47 = vld [vmem:[%s5043_s0 + $0x1b8] sm:$0xff] }
 0x3e3   :  { %3539 = vmatpush3.msra.mxu0 %v1413_v38  ;;  %3523 = vmatprep.mubr.msk.f32.mxu0 %vm3904_vm1, %v3903_v51 }
 0x3e4   :  { %3540 = vmatprep.subr.mxu0 %v1412_v40 }
 0x3e5   :  { %3541 = vmatpush3.msra.mxu0 %v1412_v40 }
 0x3e6   :  { %3524 = vmatmul.mubr.msk.f32.gmra.mxu0 %vm135_vm0, %v4238_v49  ;;  %3542 = vmatprep.subr.mxu0 %v1411_v44  ;;  %v1407_v49 = vld [vmem:[%s5043_s0 + $0x1a8] sm:$0xff] }
 0x3e7   :  { %3543 = vmatpush3.msra.mxu0 %v1411_v44  ;;  %3526 = vmatprep.mubr.msk.f32.mxu0 %vm3904_vm1, %v3903_v51 }
 0x3e8   :  { %3544 = vmatprep.subr.mxu0 %v1410_v46 }
 0x3e9   :  { %3545 = vmatpush3.msra.mxu0 %v1410_v46 }
 0x3ea   :  { %3527 = vmatmul.mubr.msk.f32.gmra.mxu0 %vm135_vm0, %v4247_v50  ;;  %3546 = vmatprep.subr.mxu0 %v1409_v47  ;;  %v1406_v50 = vld [vmem:[%s5043_s0 + $0x1a0] sm:$0xff] }
 0x3eb   :  { %3547 = vmatpush3.msra.mxu0 %v1409_v47  ;;  %3562 = vmatprep.mubr.msk.f32.mxu0 %vm135_vm0, %v4544_v61 }
 0x3ec   :  { %3548 = vmatprep.subr.mxu0 %v1408_v45 }
 0x3ed   :  { %3549 = vmatpush3.msra.mxu0 %v1408_v45 }
 0x3ee   :  { %3550 = vmatprep.subr.mxu0 %v1407_v49 }
 0x3ef   :  { %3551 = vmatpush3.msra.mxu0 %v1407_v49 }
 0x3f0   :  { %3552 = vmatprep.subr.mxu0 %v1406_v50 }
 0x3f1   :  { %3553 = vmatpush3.msra.mxu0 %v1406_v50 }
 0x3f2   :  { %3554 = vmatprep.subr.mxu0 %v1405_v48 }
 0x3f3   :  { %3555 = vmatpush3.msra.mxu0 %v1405_v48 }
 0x3f4   :  { %3556 = vmatprep.subr.mxu0 %v1404_v0 }
 0x3f5   :  { %3557 = vmatpush3.msra.mxu0 %v1404_v0 }
 0x3f6   :  { %3558 = vmatprep.subr.mxu0 %v1403_v63 }
 0x3f7   :  { %3559 = vmatpush3.msra.mxu0 %v1403_v63 }
 0x3f8   :  { %3560 = vmatprep.subr.mxu0 %v1402_v2 }
 0x3f9   :  { %3561 = vmatpush3.msra.mxu0 %v1402_v2 }
 0x3fa   :  { %3563 = vmatmul.mubr.msk.f32.vlgmr.msra.gmra.mxu0 %vm135_vm0, %v4572_v54  ;;  %3622 = vmatprep.subr.mxu0 %v1720_v58 }
 0x3fb   :  { %3623 = vmatpush3.msra.mxu0 %v1720_v58  ;;  %3565 = vmatprep.mubr.msk.f32.mxu0 %vm135_vm0, %v4579_v4 }
 0x3fc   :  { %3624 = vmatprep.subr.mxu0 %v1719_v59 }
 0x3fd   :  { %3625 = vmatpush3.msra.mxu0 %v1719_v59 }
 0x3fe   :  { %3566 = vmatmul.mubr.msk.f32.gmra.mxu0 %vm135_vm0, %v4592_v52  ;;  %3626 = vmatprep.subr.mxu0 %v1718_v6 }
 0x3ff   :  { %3627 = vmatpush3.msra.mxu0 %v1718_v6  ;;  %3568 = vmatprep.mubr.msk.f32.mxu0 %vm135_vm0, %v4599_v53 }
 0x400   :  { %3628 = vmatprep.subr.mxu0 %v1717_v56 }
 0x401   :  { %3629 = vmatpush3.msra.mxu0 %v1717_v56 }
 0x402   :  { %3569 = vmatmul.mubr.msk.f32.gmra.mxu0 %vm135_vm0, %v4612_v9  ;;  %3630 = vmatprep.subr.mxu0 %v1716_v7 }
 0x403   :  { %3631 = vmatpush3.msra.mxu0 %v1716_v7  ;;  %3571 = vmatprep.mubr.msk.f32.mxu0 %vm135_vm0, %v4619_v10 }
 0x404   :  { %3632 = vmatprep.subr.mxu0 %v1715_v8 }
 0x405   :  { %3633 = vmatpush3.msra.mxu0 %v1715_v8 }
 0x406   :  { %3572 = vmatmul.mubr.msk.f32.gmra.mxu0 %vm135_vm0, %v4632_v15  ;;  %3634 = vmatprep.subr.mxu0 %v1714_v12 }
 0x407   :  { %3635 = vmatpush3.msra.mxu0 %v1714_v12  ;;  %3574 = vmatprep.mubr.msk.f32.mxu0 %vm135_vm0, %v4639_v16 }
 0x408   :  { %3636 = vmatprep.subr.mxu0 %v1713_v13 }
 0x409   :  { %3637 = vmatpush3.msra.mxu0 %v1713_v13 }
 0x40a   :  { %3575 = vmatmul.mubr.msk.f32.gmra.mxu0 %vm135_vm0, %v4652_v21  ;;  %3638 = vmatprep.subr.mxu0 %v1712_v17 }
 0x40b   :  { %3639 = vmatpush3.msra.mxu0 %v1712_v17  ;;  %3577 = vmatprep.mubr.msk.f32.mxu0 %vm135_vm0, %v4659_v25 }
 0x40c   :  { %3640 = vmatprep.subr.mxu0 %v1711_v18 }
 0x40d   :  { %3641 = vmatpush3.msra.mxu0 %v1711_v18 }
 0x40e   :  { %3578 = vmatmul.mubr.msk.f32.gmra.mxu0 %vm135_vm0, %v4672_v30  ;;  %3642 = vmatprep.subr.mxu0 %v1710_v27 }
 0x40f   :  { %3643 = vmatpush3.msra.mxu0 %v1710_v27  ;;  %3646 = vmatprep.mubr.msk.f32.mxu0 %vm135_vm0, %v4544_v61 }
 0x410   :  { %3644 = vmatprep.subr.mxu0 %v1709_v29 }
 0x411   :  { %3645 = vmatpush3.msra.mxu0 %v1709_v29 }
 0x412   :  { %3647 = vmatmul.mubr.msk.f32.vlgmr.msra.gmra.mxu0 %vm135_vm0, %v4572_v54  ;;  %3697 = vmatprep.subr.mxu0 %v3903_v51 }
 0x413   :  { %3649 = vmatprep.mubr.msk.f32.mxu0 %vm135_vm0, %v4579_v4 }
 0x416   :  { %3650 = vmatmul.mubr.msk.f32.gmra.mxu0 %vm135_vm0, %v4592_v52 }
 0x417   :  { %3652 = vmatprep.mubr.msk.f32.mxu0 %vm135_vm0, %v4599_v53 }
 0x41a   :  { %3653 = vmatmul.mubr.msk.f32.gmra.mxu0 %vm135_vm0, %v4612_v9 }
 0x41b   :  { %3655 = vmatprep.mubr.msk.f32.mxu0 %vm135_vm0, %v4619_v10 }
 0x41e   :  { %3656 = vmatmul.mubr.msk.f32.gmra.mxu0 %vm135_vm0, %v4632_v15 }
 0x41f   :  { %3658 = vmatprep.mubr.msk.f32.mxu0 %vm135_vm0, %v4639_v16 }
 0x422   :  { %3659 = vmatmul.mubr.msk.f32.gmra.mxu0 %vm135_vm0, %v4652_v21 }
 0x423   :  { %3661 = vmatprep.mubr.msk.f32.mxu0 %vm135_vm0, %v4659_v25 }
 0x426   :  { %3662 = vmatmul.mubr.msk.f32.gmra.mxu0 %vm135_vm0, %v4672_v30 }
 0x427   :  { %3703 = vmatprep.mubr.msk.f32.mxu0 %vm3904_vm1, %v3903_v51 }
 0x48a   :  { %v1089_v33 = vpop.f32.mrf.mxu0 }
 0x48b   :  { %v1090_v35 = vadd.f32 %v1089_v33, %v4428_v5 }
 0x48c   :  { %v3453_v37 = vpop.f32.mrf.mxu0 }
 0x48d   :  { %v1093_v39 = vmax.f32 %v1090_v35, 0.0 }
 0x48f   :  { %1094 = vst [vmem:[#allocation2 + $0x4] sm:$0x3] %v1093_v39 }
 0x4a2   :  { %v1310_v41 = vpop.f32.mrf.mxu0 }
 0x4a3   :  { %v1324_v34 = vmax.f32 %v1310_v41, 0.0 }
 0x4a4   :  { %v3522_v42 = vpop.f32.mrf.mxu0 }
 0x4a6   :  { %v1315_v43 = vpop.f32.mrf.mxu0 }
 0x4a7   :  { %v1325_v26 = vmax.f32 %v1315_v43, 0.0 }
 0x4a8   :  { %v3525_v20 = vpop.f32.mrf.mxu0 }
 0x4aa   :  { %v1320_v22 = vpop.f32.mrf.mxu0 }
 0x4ab   :  { %v1326_v28 = vmax.f32 %v1320_v22, 0.0 }
 0x4ac   :  { %v3528_v32 = vpop.f32.mrf.mxu0 }
 0x4ad   :  { %3530 = vmatpush3.msk.msra.mxu1 %vm405_vm2, %v1326_v28  ;;  %v4738_v32 = vld [vmem:[%s5048_s3] sm:$0xff] }
 0x4ae   :  { %3531 = vmatprep.subr.mxu1 %v3903_v51 }
 0x4af   :  { %3532 = vmatpush3.msra.mxu1 %v1325_v26 }
 0x4b0   :  { %3533 = vmatprep.subr.mxu1 %v3903_v51 }
 0x4b1   :  { %3534 = vmatpush3.msra.mxu1 %v1324_v34  ;;  %v4748_v34 = vld [vmem:[%s5048_s3 + $0x8] sm:$0xff] }
 0x4b2   :  { %3536 = vmatmul.mubr.msk.f32.vlgmr.msra.gmra.mxu1 %vm401_vm3, %v4264_v23  ;;  %3580 = vmatprep.subr.mxu1 %v3903_v51 }
 0x4b3   :  { %3604 = vmatprep.mubr.msk.f32.mxu1 %vm3904_vm1, %v3903_v51 }
 0x4ba   :  { %v3564_v38 = vpop.f32.mrf.mxu0 }
 0x4bb   :  { %v1486_v42 = vadd.f32 %v3564_v38, %v4212_v31  ;;  %v4757_v38 = vld [vmem:[%s5048_s3 + $0x10] sm:$0xf] }
 0x4bc   :  { %v1480_v40 = vpop.f32.mrf.mxu0 }
 0x4bd   :  { %v1481_v20 = vadd.f32 %v1480_v40, %v4216_v36  ;;  %v1540_v26 = vmax.f32 %v1486_v42, 0.0  ;;  %v4775_v42 = vld [vmem:[%s5049_s4] sm:$0x3] }
 0x4be   :  { %v3567_v44 = vpop.f32.mrf.mxu0 }
 0x4bf   :  { %v1496_v35 = vadd.f32 %v3567_v44, %v4202_v19  ;;  %v1539_v28 = vmax.f32 %v1481_v20, 0.0 }
 0x4c0   :  { %v1490_v46 = vpop.f32.mrf.mxu0 }
 0x4c1   :  { %v1491_v39 = vadd.f32 %v1490_v46, %v4206_v24  ;;  %v1542_v43 = vmax.f32 %v1496_v35, 0.0 }
 0x4c2   :  { %v3570_v47 = vpop.f32.mrf.mxu0 }
 0x4c3   :  { %v1506_v18 = vadd.f32 %v3570_v47, %v4193_v11  ;;  %v1541_v22 = vmax.f32 %v1491_v39, 0.0 }
 0x4c4   :  { %v1500_v45 = vpop.f32.mrf.mxu0 }
 0x4c5   :  { %v1501_v29 = vadd.f32 %v1500_v45, %v4196_v14  ;;  %v1544_v37 = vmax.f32 %v1506_v18, 0.0 }
 0x4c6   :  { %v3573_v49 = vpop.f32.mrf.mxu0 }
 0x4c7   :  { %v1516_v8 = vadd.f32 %v3573_v49, %v4186_v1  ;;  %v1543_v41 = vmax.f32 %v1501_v29, 0.0 }
 0x4c8   :  { %v1510_v50 = vpop.f32.mrf.mxu0 }
 0x4c9   :  { %v1511_v13 = vadd.f32 %v1510_v50, %v4188_v3  ;;  %v1546_v27 = vmax.f32 %v1516_v8, 0.0 }
 0x4ca   :  { %v3576_v48 = vpop.f32.mrf.mxu0 }
 0x4cb   :  { %v1526_v23 = vadd.f32 %v3576_v48, %v4180_v57  ;;  %v1545_v33 = vmax.f32 %v1511_v13, 0.0 }
 0x4cc   :  { %v1520_v0 = vpop.f32.mrf.mxu0 }
 0x4cd   :  { %v1521_v56 = vadd.f32 %v1520_v0, %v4184_v62  ;;  %v1548_v12 = vmax.f32 %v1526_v23, 0.0 }
 0x4ce   :  { %v3579_v63 = vpop.f32.mrf.mxu0 }
 0x4cf   :  { %v1536_v2 = vadd.f32 %v3579_v63, %v4178_v55  ;;  %v1547_v17 = vmax.f32 %v1521_v56, 0.0 }
 0x4d0   :  { %v1530_v58 = vpop.f32.mrf.mxu0 }
 0x4d1   :  { %v1550_v59 = vmax.f32 %v1536_v2, 0.0  ;;  %v1531_v6 = vadd.f32 %v1530_v58, %v4182_v60 }
 0x4d2   :  { %v3648_v45 = vpop.f32.mrf.mxu0 }
 0x4d3   :  { %v1549_v7 = vmax.f32 %v1531_v6, 0.0  ;;  %3581 = vmatpush3.msra.mxu1 %v1550_v59 }
 0x4d4   :  { %3582 = vmatprep.subr.mxu1 %v3903_v51  ;;  %v4764_v49 = vpop.f32.mrf.mxu0 }
 0x4d5   :  { %3583 = vmatpush3.msra.mxu1 %v1549_v7 }
 0x4d6   :  { %3584 = vmatprep.subr.mxu1 %v3903_v51  ;;  %v3651_v50 = vpop.f32.mrf.mxu0 }
 0x4d7   :  { %3585 = vmatpush3.msra.mxu1 %v1548_v12 }
 0x4d8   :  { %3586 = vmatprep.subr.mxu1 %v3903_v51  ;;  %v1797_v48 = vpop.f32.mrf.mxu0 }
 0x4d9   :  { %3587 = vmatpush3.msra.mxu1 %v1547_v17 }
 0x4da   :  { %3588 = vmatprep.subr.mxu1 %v3903_v51  ;;  %v3654_v0 = vpop.f32.mrf.mxu0 }
 0x4db   :  { %3589 = vmatpush3.msra.mxu1 %v1546_v27 }
 0x4dc   :  { %3590 = vmatprep.subr.mxu1 %v3903_v51  ;;  %v1807_v63 = vpop.f32.mrf.mxu0 }
 0x4dd   :  { %3591 = vmatpush3.msra.mxu1 %v1545_v33 }
 0x4de   :  { %3592 = vmatprep.subr.mxu1 %v3903_v51  ;;  %v3657_v2 = vpop.f32.mrf.mxu0 }
 0x4df   :  { %3593 = vmatpush3.msra.mxu1 %v1544_v37 }
 0x4e0   :  { %3594 = vmatprep.subr.mxu1 %v3903_v51  ;;  %v1817_v58 = vpop.f32.mrf.mxu0 }
 0x4e1   :  { %3595 = vmatpush3.msra.mxu1 %v1543_v41 }
 0x4e2   :  { %3596 = vmatprep.subr.mxu1 %v3903_v51  ;;  %v3660_v23 = vpop.f32.mrf.mxu0 }
 0x4e3   :  { %3597 = vmatpush3.msra.mxu1 %v1542_v43  ;;  %v1833_v39 = vadd.f32 %v3660_v23, %v4180_v57 }
 0x4e4   :  { %3598 = vmatprep.subr.mxu1 %v3903_v51  ;;  %v1827_v6 = vpop.f32.mrf.mxu0 }
 0x4e5   :  { %3599 = vmatpush3.msra.mxu1 %v1541_v22  ;;  %v1828_v43 = vadd.f32 %v1827_v6, %v4184_v62  ;;  %v1823_v22 = vadd.f32 %v3657_v2, %v4186_v1  ;;  %v1803_v2 = vadd.f32 %v3651_v50, %v4202_v19 }
 0x4e6   :  { %3600 = vmatprep.subr.mxu1 %v3903_v51  ;;  %v3663_v8 = vpop.f32.mrf.mxu0 }
 0x4e7   :  { %3601 = vmatpush3.msra.mxu1 %v1540_v26  ;;  %v1843_v29 = vadd.f32 %v3663_v8, %v4178_v55  ;;  %v1855_v26 = vmax.f32 %v1833_v39, 0.0  ;;  %v2025_v8 = vld [vmem:[%s5043_s0 + $0x288] sm:$0xff]  ;;  %v2334_v39 = vld [vmem:[%s5043_s0 + $0x2f8] sm:$0xff] }
 0x4e8   :  { %3602 = vmatprep.subr.mxu1 %v3903_v51  ;;  %v1837_v18 = vpop.f32.mrf.mxu0 }
 0x4e9   :  { %3603 = vmatpush3.msra.mxu1 %v1539_v28  ;;  %v1838_v35 = vadd.f32 %v1837_v18, %v4182_v60  ;;  %v1857_v41 = vmax.f32 %v1843_v29, 0.0  ;;  %v1818_v28 = vadd.f32 %v1817_v58, %v4188_v3  ;;  %v1798_v58 = vadd.f32 %v1797_v48, %v4206_v24  ;;  %v2021_v18 = vld [vmem:[%s5043_s0 + $0x268] sm:$0xff]  ;;  %v2019_v29 = vld [vmem:[%s5043_s0 + $0x258] sm:$0xff] }
 0x4ea   :  { %3605 = vmatmul.mubr.msk.f32.vlgmr.msra.gmra.mxu1 %vm135_vm0, %v4738_v32  ;;  %3613 = vmatprep.subr.mxu1 %v3903_v51 }
 0x4eb   :  { %3607 = vmatprep.mubr.msk.f32.mxu1 %vm3904_vm1, %v3903_v51  ;;  %v1856_v20 = vmax.f32 %v1838_v35, 0.0  ;;  %v1852_v23 = vmax.f32 %v1818_v28, 0.0  ;;  %v1848_v50 = vmax.f32 %v1798_v58, 0.0  ;;  %v2017_v35 = vld [vmem:[%s5043_s0 + $0x248] sm:$0xff] }
 0x4ec   :  { %v2328_v28 = vld [vmem:[%s5043_s0 + $0x2c8] sm:$0xff] }
 0x4ee   :  { %3608 = vmatmul.mubr.msk.f32.gmra.mxu1 %vm135_vm0, %v4748_v34 }
 0x4ef   :  { %3610 = vmatprep.mubr.msk.f32.mxu1 %vm3904_vm1, %v3903_v51 }
 0x4f2   :  { %3611 = vmatmul.mubr.msk.f32.gmra.mxu1 %vm135_vm0, %v4757_v38 }
 0x4f3   :  { %3619 = vmatprep.mubr.msk.f32.mxu1 %vm3904_vm1, %v3903_v51 }
 0x572   :  { %v1396_v40 = vpop.f32.mrf.mxu1 }
 0x573   :  { %v1397_v44 = vadd.f32 %v1396_v40, %v4428_v5  ;;  %v1854_v40 = vmax.f32 %v1828_v43, 0.0  ;;  %v2332_v43 = vld [vmem:[%s5043_s0 + $0x2e8] sm:$0xff] }
 0x574   :  { %v3537_v46 = vpop.f32.mrf.mxu1 }
 0x575   :  { %v1400_v47 = vmax.f32 %v1397_v44, 0.0  ;;  %v1813_v44 = vadd.f32 %v3654_v0, %v4193_v11  ;;  %v1853_v46 = vmax.f32 %v1823_v22, 0.0  ;;  %v1793_v0 = vadd.f32 %v3648_v45, %v4212_v31  ;;  %v2027_v45 = vld [vmem:[%s5043_s0 + $0x298] sm:$0xff] }
 0x576   :  { %v2330_v22 = vld [vmem:[%s5043_s0 + $0x2d8] sm:$0xff] }
 0x577   :  { %1401 = vst [vmem:[#allocation2 + $0x6] sm:$0x3] %v1400_v47  ;;  %v1808_v47 = vadd.f32 %v1807_v63, %v4196_v14  ;;  %v1788_v63 = vadd.f32 %v4764_v49, %v4216_v36  ;;  %v2026_v49 = vld [vmem:[%s5043_s0 + $0x290] sm:$0xff] }
 0x579   :  { %v1850_v6 = vmax.f32 %v1808_v47, 0.0  ;;  %v1846_v48 = vmax.f32 %v1788_v63, 0.0  ;;  %v2324_v47 = vld [vmem:[%s5043_s0 + $0x2a8] sm:$0xff] }
 0x5aa   :  { %v1617_v59 = vpop.f32.mrf.mxu1 }
 0x5ab   :  { %v1631_v37 = vmax.f32 %v1617_v59, 0.0  ;;  %v1851_v59 = vmax.f32 %v1813_v44, 0.0  ;;  %v2326_v44 = vld [vmem:[%s5043_s0 + $0x2b8] sm:$0xff] }
 0x5ac   :  { %v3606_v56 = vpop.f32.mrf.mxu1 }
 0x5ad   :  { %v1849_v56 = vmax.f32 %v1803_v2, 0.0 }
 0x5ae   :  { %v1622_v7 = vpop.f32.mrf.mxu1 }
 0x5af   :  { %v1632_v33 = vmax.f32 %v1622_v7, 0.0  ;;  %v1847_v7 = vmax.f32 %v1793_v0, 0.0 }
 0x5b0   :  { %v3609_v12 = vpop.f32.mrf.mxu1 }
 0x5b1   :  { %v2024_v12 = vld [vmem:[%s5043_s0 + $0x280] sm:$0xff] }
 0x5b2   :  { %v1627_v13 = vpop.f32.mrf.mxu1 }
 0x5b3   :  { %v1633_v17 = vmax.f32 %v1627_v13, 0.0  ;;  %v2023_v13 = vld [vmem:[%s5043_s0 + $0x278] sm:$0xff] }
 0x5b4   :  { %v3612_v27 = vpop.f32.mrf.mxu1 }
 0x5b5   :  { %3614 = vmatpush3.msk.msra.mxu1 %vm405_vm2, %v1633_v17  ;;  %v2022_v17 = vld [vmem:[%s5043_s0 + $0x270] sm:$0xff]  ;;  %v2020_v27 = vld [vmem:[%s5043_s0 + $0x260] sm:$0xff] }
 0x5b6   :  { %3615 = vmatprep.subr.mxu1 %v3903_v51 }
 0x5b7   :  { %3616 = vmatpush3.msra.mxu1 %v1632_v33  ;;  %v2018_v33 = vld [vmem:[%s5043_s0 + $0x250] sm:$0xff] }
 0x5b8   :  { %3617 = vmatprep.subr.mxu1 %v3903_v51 }
 0x5b9   :  { %3618 = vmatpush3.msra.mxu1 %v1631_v37  ;;  %v2016_v37 = vld [vmem:[%s5043_s0 + $0x240] sm:$0xff] }
 0x5ba   :  { %3620 = vmatmul.mubr.msk.f32.vlgmr.msra.gmra.mxu1 %vm401_vm3, %v4775_v42  ;;  %3664 = vmatprep.subr.mxu1 %v3903_v51 }
 0x5bb   :  { %3665 = vmatpush3.msra.mxu1 %v1857_v41  ;;  %3688 = vmatprep.mubr.msk.f32.mxu1 %vm3904_vm1, %v3903_v51  ;;  %v2333_v41 = vld [vmem:[%s5043_s0 + $0x2f0] sm:$0xff] }
 0x5bc   :  { %3666 = vmatprep.subr.mxu1 %v3903_v51 }
 0x5bd   :  { %3667 = vmatpush3.msra.mxu1 %v1856_v20  ;;  %v2331_v20 = vld [vmem:[%s5043_s0 + $0x2e0] sm:$0xff] }
 0x5be   :  { %3668 = vmatprep.subr.mxu1 %v3903_v51 }
 0x5bf   :  { %3669 = vmatpush3.msra.mxu1 %v1855_v26  ;;  %v2329_v26 = vld [vmem:[%s5043_s0 + $0x2d0] sm:$0xff] }
 0x5c0   :  { %3670 = vmatprep.subr.mxu1 %v3903_v51 }
 0x5c1   :  { %3671 = vmatpush3.msra.mxu1 %v1854_v40  ;;  %v2327_v40 = vld [vmem:[%s5043_s0 + $0x2c0] sm:$0xff] }
 0x5c2   :  { %3672 = vmatprep.subr.mxu1 %v3903_v51 }
 0x5c3   :  { %3673 = vmatpush3.msra.mxu1 %v1853_v46  ;;  %v2325_v46 = vld [vmem:[%s5043_s0 + $0x2b0] sm:$0xff] }
 0x5c4   :  { %3674 = vmatprep.subr.mxu1 %v3903_v51 }
 0x5c5   :  { %3675 = vmatpush3.msra.mxu1 %v1852_v23  ;;  %v2323_v23 = vld [vmem:[%s5043_s0 + $0x2a0] sm:$0xff] }
 0x5c6   :  { %3676 = vmatprep.subr.mxu1 %v3903_v51 }
 0x5c7   :  { %3677 = vmatpush3.msra.mxu1 %v1851_v59 }
 0x5c8   :  { %3678 = vmatprep.subr.mxu1 %v3903_v51 }
 0x5c9   :  { %3679 = vmatpush3.msra.mxu1 %v1850_v6 }
 0x5ca   :  { %3680 = vmatprep.subr.mxu1 %v3903_v51 }
 0x5cb   :  { %3681 = vmatpush3.msra.mxu1 %v1849_v56 }
 0x5cc   :  { %3682 = vmatprep.subr.mxu1 %v3903_v51 }
 0x5cd   :  { %3683 = vmatpush3.msra.mxu1 %v1848_v50 }
 0x5ce   :  { %3684 = vmatprep.subr.mxu1 %v3903_v51 }
 0x5cf   :  { %3685 = vmatpush3.msra.mxu1 %v1847_v7 }
 0x5d0   :  { %3686 = vmatprep.subr.mxu1 %v3903_v51 }
 0x5d1   :  { %3687 = vmatpush3.msra.mxu1 %v1846_v48 }
 0x5d2   :  { %3689 = vmatmul.mubr.msk.f32.vlgmr.msra.gmra.mxu1 %vm135_vm0, %v4738_v32  ;;  %3706 = vmatprep.subr.mxu1 %v2027_v45 }
 0x5d3   :  { %3707 = vmatpush3.msra.mxu1 %v2027_v45  ;;  %3691 = vmatprep.mubr.msk.f32.mxu1 %vm3904_vm1, %v3903_v51 }
 0x5d4   :  { %3708 = vmatprep.subr.mxu1 %v2026_v49 }
 0x5d5   :  { %3709 = vmatpush3.msra.mxu1 %v2026_v49 }
 0x5d6   :  { %3692 = vmatmul.mubr.msk.f32.gmra.mxu1 %vm135_vm0, %v4748_v34  ;;  %3710 = vmatprep.subr.mxu1 %v2025_v8 }
 0x5d7   :  { %3711 = vmatpush3.msra.mxu1 %v2025_v8  ;;  %3694 = vmatprep.mubr.msk.f32.mxu1 %vm3904_vm1, %v3903_v51 }
 0x5d8   :  { %3712 = vmatprep.subr.mxu1 %v2024_v12 }
 0x5d9   :  { %3713 = vmatpush3.msra.mxu1 %v2024_v12 }
 0x5da   :  { %3695 = vmatmul.mubr.msk.f32.gmra.mxu1 %vm135_vm0, %v4757_v38  ;;  %3714 = vmatprep.subr.mxu1 %v2023_v13 }
 0x5db   :  { %3715 = vmatpush3.msra.mxu1 %v2023_v13  ;;  %3730 = vmatprep.mubr.msk.f32.mxu1 %vm135_vm0, %v4544_v61 }
 0x5dc   :  { %3716 = vmatprep.subr.mxu1 %v2022_v17 }
 0x5dd   :  { %3717 = vmatpush3.msra.mxu1 %v2022_v17 }
 0x5de   :  { %3718 = vmatprep.subr.mxu1 %v2021_v18 }
 0x5df   :  { %3719 = vmatpush3.msra.mxu1 %v2021_v18 }
 0x5e0   :  { %3720 = vmatprep.subr.mxu1 %v2020_v27 }
 0x5e1   :  { %3721 = vmatpush3.msra.mxu1 %v2020_v27 }
 0x5e2   :  { %3722 = vmatprep.subr.mxu1 %v2019_v29 }
 0x5e3   :  { %3723 = vmatpush3.msra.mxu1 %v2019_v29 }
 0x5e4   :  { %3724 = vmatprep.subr.mxu1 %v2018_v33 }
 0x5e5   :  { %3725 = vmatpush3.msra.mxu1 %v2018_v33 }
 0x5e6   :  { %3726 = vmatprep.subr.mxu1 %v2017_v35 }
 0x5e7   :  { %3727 = vmatpush3.msra.mxu1 %v2017_v35 }
 0x5e8   :  { %3728 = vmatprep.subr.mxu1 %v2016_v37 }
 0x5e9   :  { %3729 = vmatpush3.msra.mxu1 %v2016_v37 }
 0x5ea   :  { %3731 = vmatmul.mubr.msk.f32.vlgmr.msra.gmra.mxu1 %vm135_vm0, %v4572_v54  ;;  %3790 = vmatprep.subr.mxu1 %v2334_v39 }
 0x5eb   :  { %3791 = vmatpush3.msra.mxu1 %v2334_v39  ;;  %3733 = vmatprep.mubr.msk.f32.mxu1 %vm135_vm0, %v4579_v4 }
 0x5ec   :  { %3792 = vmatprep.subr.mxu1 %v2333_v41 }
 0x5ed   :  { %3793 = vmatpush3.msra.mxu1 %v2333_v41 }
 0x5ee   :  { %3734 = vmatmul.mubr.msk.f32.gmra.mxu1 %vm135_vm0, %v4592_v52  ;;  %3794 = vmatprep.subr.mxu1 %v2332_v43 }
 0x5ef   :  { %3795 = vmatpush3.msra.mxu1 %v2332_v43  ;;  %3736 = vmatprep.mubr.msk.f32.mxu1 %vm135_vm0, %v4599_v53 }
 0x5f0   :  { %3796 = vmatprep.subr.mxu1 %v2331_v20 }
 0x5f1   :  { %3797 = vmatpush3.msra.mxu1 %v2331_v20 }
 0x5f2   :  { %3737 = vmatmul.mubr.msk.f32.gmra.mxu1 %vm135_vm0, %v4612_v9  ;;  %3798 = vmatprep.subr.mxu1 %v2330_v22 }
 0x5f3   :  { %3799 = vmatpush3.msra.mxu1 %v2330_v22  ;;  %3739 = vmatprep.mubr.msk.f32.mxu1 %vm135_vm0, %v4619_v10 }
 0x5f4   :  { %3800 = vmatprep.subr.mxu1 %v2329_v26 }
 0x5f5   :  { %3801 = vmatpush3.msra.mxu1 %v2329_v26 }
 0x5f6   :  { %3740 = vmatmul.mubr.msk.f32.gmra.mxu1 %vm135_vm0, %v4632_v15  ;;  %3802 = vmatprep.subr.mxu1 %v2328_v28 }
 0x5f7   :  { %3803 = vmatpush3.msra.mxu1 %v2328_v28  ;;  %3742 = vmatprep.mubr.msk.f32.mxu1 %vm135_vm0, %v4639_v16 }
 0x5f8   :  { %3804 = vmatprep.subr.mxu1 %v2327_v40 }
 0x5f9   :  { %3805 = vmatpush3.msra.mxu1 %v2327_v40 }
 0x5fa   :  { %3743 = vmatmul.mubr.msk.f32.gmra.mxu1 %vm135_vm0, %v4652_v21  ;;  %3806 = vmatprep.subr.mxu1 %v2326_v44 }
 0x5fb   :  { %3807 = vmatpush3.msra.mxu1 %v2326_v44  ;;  %3745 = vmatprep.mubr.msk.f32.mxu1 %vm135_vm0, %v4659_v25 }
 0x5fc   :  { %3808 = vmatprep.subr.mxu1 %v2325_v46 }
 0x5fd   :  { %3809 = vmatpush3.msra.mxu1 %v2325_v46 }
 0x5fe   :  { %3746 = vmatmul.mubr.msk.f32.gmra.mxu1 %vm135_vm0, %v4672_v30  ;;  %3810 = vmatprep.subr.mxu1 %v2324_v47 }
 0x5ff   :  { %3811 = vmatpush3.msra.mxu1 %v2324_v47  ;;  %3814 = vmatprep.mubr.msk.f32.mxu1 %vm135_vm0, %v4544_v61 }
 0x600   :  { %3812 = vmatprep.subr.mxu1 %v2323_v23 }
 0x601   :  { %3813 = vmatpush3.msra.mxu1 %v2323_v23 }
 0x602   :  { %3815 = vmatmul.mubr.msk.f32.vlgmr.msra.gmra.mxu1 %vm135_vm0, %v4572_v54  ;;  %3865 = vmatprep.subr.mxu1 %v3903_v51 }
 0x603   :  { %3817 = vmatprep.mubr.msk.f32.mxu1 %vm135_vm0, %v4579_v4 }
 0x606   :  { %3818 = vmatmul.mubr.msk.f32.gmra.mxu1 %vm135_vm0, %v4592_v52 }
 0x607   :  { %3820 = vmatprep.mubr.msk.f32.mxu1 %vm135_vm0, %v4599_v53 }
 0x60a   :  { %3821 = vmatmul.mubr.msk.f32.gmra.mxu1 %vm135_vm0, %v4612_v9 }
 0x60b   :  { %3823 = vmatprep.mubr.msk.f32.mxu1 %vm135_vm0, %v4619_v10 }
 0x60e   :  { %3824 = vmatmul.mubr.msk.f32.gmra.mxu1 %vm135_vm0, %v4632_v15 }
 0x60f   :  { %3826 = vmatprep.mubr.msk.f32.mxu1 %vm135_vm0, %v4639_v16 }
 0x612   :  { %3827 = vmatmul.mubr.msk.f32.gmra.mxu1 %vm135_vm0, %v4652_v21 }
 0x613   :  { %3829 = vmatprep.mubr.msk.f32.mxu1 %vm135_vm0, %v4659_v25 }
 0x616   :  { %3830 = vmatmul.mubr.msk.f32.gmra.mxu1 %vm135_vm0, %v4672_v30 }
 0x617   :  { %3871 = vmatprep.mubr.msk.f32.mxu1 %vm3904_vm1, %v3903_v51 }
 0x67a   :  { %v1703_v61 = vpop.f32.mrf.mxu1 }
 0x67b   :  { %v1704_v54 = vadd.f32 %v1703_v61, %v4428_v5 }
 0x67c   :  { %v3621_v4 = vpop.f32.mrf.mxu1 }
 0x67d   :  { %v1707_v52 = vmax.f32 %v1704_v54, 0.0 }
 0x67f   :  { %1708 = vst [vmem:[#allocation2 + $0x8] sm:$0x3] %v1707_v52 }
 0x692   :  { %v1924_v53 = vpop.f32.mrf.mxu1 }
 0x693   :  { %v1938_v30 = vmax.f32 %v1924_v53, 0.0 }
 0x694   :  { %v3690_v9 = vpop.f32.mrf.mxu1 }
 0x696   :  { %v1929_v10 = vpop.f32.mrf.mxu1 }
 0x697   :  { %v1939_v21 = vmax.f32 %v1929_v10, 0.0 }
 0x698   :  { %v3693_v15 = vpop.f32.mrf.mxu1 }
 0x69a   :  { %v1934_v16 = vpop.f32.mrf.mxu1 }
 0x69b   :  { %v1940_v2 = vmax.f32 %v1934_v16, 0.0 }
 0x69c   :  { %v3696_v25 = vpop.f32.mrf.mxu1 }
 0x69d   :  { %3698 = vmatpush3.msk.msra.mxu0 %vm405_vm2, %v1940_v2 }
 0x69e   :  { %3699 = vmatprep.subr.mxu0 %v3903_v51 }
 0x69f   :  { %3700 = vmatpush3.msra.mxu0 %v1939_v21 }
 0x6a0   :  { %3701 = vmatprep.subr.mxu0 %v3903_v51 }
 0x6a1   :  { %3702 = vmatpush3.msra.mxu0 %v1938_v30 }
 0x6a2   :  { %3704 = vmatmul.mubr.msk.f32.vlgmr.msra.gmra.mxu0 %vm401_vm3, %v4775_v42  ;;  %3748 = vmatprep.subr.mxu0 %v3903_v51 }
 0x6a3   :  { %3772 = vmatprep.mubr.msk.f32.mxu0 %vm3904_vm1, %v3903_v51 }
 0x6aa   :  { %v3732_v59 = vpop.f32.mrf.mxu1 }
 0x6ab   :  { %v2100_v46 = vadd.f32 %v3732_v59, %v4212_v31 }
 0x6ac   :  { %v2094_v58 = vpop.f32.mrf.mxu1 }
 0x6ad   :  { %v2095_v23 = vadd.f32 %v2094_v58, %v4216_v36  ;;  %v2154_v54 = vmax.f32 %v2100_v46, 0.0 }
 0x6ae   :  { %v3735_v6 = vpop.f32.mrf.mxu1 }
 0x6af   :  { %v2110_v26 = vadd.f32 %v3735_v6, %v4202_v19  ;;  %v2153_v4 = vmax.f32 %v2095_v23, 0.0 }
 0x6b0   :  { %v2104_v0 = vpop.f32.mrf.mxu1 }
 0x6b1   :  { %v2105_v40 = vadd.f32 %v2104_v0, %v4206_v24  ;;  %v2156_v47 = vmax.f32 %v2110_v26, 0.0 }
 0x6b2   :  { %v3738_v56 = vpop.f32.mrf.mxu1 }
 0x6b3   :  { %v2120_v41 = vadd.f32 %v3738_v56, %v4193_v11  ;;  %v2155_v61 = vmax.f32 %v2105_v40, 0.0 }
 0x6b4   :  { %v2114_v63 = vpop.f32.mrf.mxu1 }
 0x6b5   :  { %v2115_v20 = vadd.f32 %v2114_v63, %v4196_v14  ;;  %v2158_v28 = vmax.f32 %v2120_v41, 0.0 }
 0x6b6   :  { %v3741_v50 = vpop.f32.mrf.mxu1 }
 0x6b7   :  { %v2130_v33 = vadd.f32 %v3741_v50, %v4186_v1  ;;  %v2157_v44 = vmax.f32 %v2115_v20, 0.0 }
 0x6b8   :  { %v2124_v7 = vpop.f32.mrf.mxu1 }
 0x6b9   :  { %v2125_v37 = vadd.f32 %v2124_v7, %v4188_v3  ;;  %v2160_v43 = vmax.f32 %v2130_v33, 0.0 }
 0x6ba   :  { %v3744_v48 = vpop.f32.mrf.mxu1 }
 0x6bb   :  { %v2140_v13 = vadd.f32 %v3744_v48, %v4180_v57  ;;  %v2159_v22 = vmax.f32 %v2125_v37, 0.0 }
 0x6bc   :  { %v2134_v45 = vpop.f32.mrf.mxu1 }
 0x6bd   :  { %v2135_v27 = vadd.f32 %v2134_v45, %v4184_v62  ;;  %v2162_v35 = vmax.f32 %v2140_v13, 0.0 }
 0x6be   :  { %v3747_v49 = vpop.f32.mrf.mxu1 }
 0x6bf   :  { %v2150_v8 = vadd.f32 %v3747_v49, %v4178_v55  ;;  %v2161_v39 = vmax.f32 %v2135_v27, 0.0 }
 0x6c0   :  { %v2144_v12 = vpop.f32.mrf.mxu1 }
 0x6c1   :  { %v2164_v17 = vmax.f32 %v2150_v8, 0.0  ;;  %v2145_v18 = vadd.f32 %v2144_v12, %v4182_v60 }
 0x6c2   :  { %v3816_v15 = vpop.f32.mrf.mxu1 }
 0x6c3   :  { %v2163_v29 = vmax.f32 %v2145_v18, 0.0  ;;  %3749 = vmatpush3.msra.mxu0 %v2164_v17 }
 0x6c4   :  { %3750 = vmatprep.subr.mxu0 %v3903_v51  ;;  %v4982_v16 = vpop.f32.mrf.mxu1 }
 0x6c5   :  { %3751 = vmatpush3.msra.mxu0 %v2163_v29 }
 0x6c6   :  { %3752 = vmatprep.subr.mxu0 %v3903_v51  ;;  %v3819_v21 = vpop.f32.mrf.mxu1 }
 0x6c7   :  { %3753 = vmatpush3.msra.mxu0 %v2162_v35 }
 0x6c8   :  { %3754 = vmatprep.subr.mxu0 %v3903_v51  ;;  %v2411_v2 = vpop.f32.mrf.mxu1 }
 0x6c9   :  { %3755 = vmatpush3.msra.mxu0 %v2161_v39 }
 0x6ca   :  { %3756 = vmatprep.subr.mxu0 %v3903_v51  ;;  %v3822_v25 = vpop.f32.mrf.mxu1 }
 0x6cb   :  { %3757 = vmatpush3.msra.mxu0 %v2160_v43 }
 0x6cc   :  { %3758 = vmatprep.subr.mxu0 %v3903_v51  ;;  %v2421_v30 = vpop.f32.mrf.mxu1 }
 0x6cd   :  { %3759 = vmatpush3.msra.mxu0 %v2159_v22  ;;  %v2422_v43 = vadd.f32 %v2421_v30, %v4196_v14  ;;  %v2402_v14 = vadd.f32 %v4982_v16, %v4216_v36 }
 0x6ce   :  { %3760 = vmatprep.subr.mxu0 %v3903_v51  ;;  %v3825_v59 = vpop.f32.mrf.mxu1 }
 0x6cf   :  { %3761 = vmatpush3.msra.mxu0 %v2158_v28  ;;  %v2464_v26 = vmax.f32 %v2422_v43, 0.0 }
 0x6d0   :  { %3762 = vmatprep.subr.mxu0 %v3903_v51  ;;  %v2431_v58 = vpop.f32.mrf.mxu1 }
 0x6d1   :  { %3763 = vmatpush3.msra.mxu0 %v2157_v44 }
 0x6d2   :  { %3764 = vmatprep.subr.mxu0 %v3903_v51  ;;  %v3828_v6 = vpop.f32.mrf.mxu1 }
 0x6d3   :  { %3765 = vmatpush3.msra.mxu0 %v2156_v47  ;;  %v2447_v29 = vadd.f32 %v3828_v6, %v4180_v57  ;;  %v2432_v57 = vadd.f32 %v2431_v58, %v4188_v3  ;;  %v2412_v3 = vadd.f32 %v2411_v2, %v4206_v24  ;;  %v2460_v24 = vmax.f32 %v2402_v14, 0.0  ;;  %v2637_v2 = vpop.permute.xlu1 %2636 }
 0x6d4   :  { %3766 = vmatprep.subr.mxu0 %v3903_v51  ;;  %v2441_v56 = vpop.f32.mrf.mxu1 }
 0x6d5   :  { %3767 = vmatpush3.msra.mxu0 %v2155_v61  ;;  %v2469_v37 = vmax.f32 %v2447_v29, 0.0  ;;  %v2466_v20 = vmax.f32 %v2432_v57, 0.0 }
 0x6d6   :  { %3768 = vmatprep.subr.mxu0 %v3903_v51  ;;  %v3831_v7 = vpop.f32.mrf.mxu1 }
 0x6d7   :  { %3769 = vmatpush3.msra.mxu0 %v2154_v54  ;;  %v2457_v13 = vadd.f32 %v3831_v7, %v4178_v55  ;;  %v2442_v55 = vadd.f32 %v2441_v56, %v4184_v62  ;;  %v2427_v62 = vadd.f32 %v3822_v25, %v4193_v11  ;;  %v2407_v11 = vadd.f32 %v3816_v15, %v4212_v31 }
 0x6d8   :  { %3770 = vmatprep.subr.mxu0 %v3903_v51  ;;  %v2451_v8 = vpop.f32.mrf.mxu1 }
 0x6d9   :  { %3771 = vmatpush3.msra.mxu0 %v2153_v4  ;;  %v2452_v18 = vadd.f32 %v2451_v8, %v4182_v60  ;;  %v2471_v33 = vmax.f32 %v2457_v13, 0.0  ;;  %v2437_v60 = vadd.f32 %v3825_v59, %v4186_v1  ;;  %v2468_v39 = vmax.f32 %v2442_v55, 0.0 }
 0x6da   :  { %3773 = vmatmul.mubr.msk.f32.vlgmr.msra.gmra.mxu0 %vm135_vm0, %v4738_v32  ;;  %3781 = vmatprep.subr.mxu0 %v3903_v51  ;;  %v2417_v1 = vadd.f32 %v3819_v21, %v4202_v19  ;;  %v2465_v22 = vmax.f32 %v2427_v62, 0.0  ;;  %v2462_v19 = vmax.f32 %v2412_v3, 0.0  ;;  %v2461_v40 = vmax.f32 %v2407_v11, 0.0  ;;  %v2630_v21 = vld [vmem:[%s5050_s6] sm:$0xf] }
 0x6db   :  { %3775 = vmatprep.mubr.msk.f32.mxu0 %vm3904_vm1, %v3903_v51  ;;  %v2470_v35 = vmax.f32 %v2452_v18, 0.0  ;;  %v2467_v41 = vmax.f32 %v2437_v60, 0.0 }
 0x6dc   :  { %v2463_v28 = vmax.f32 %v2417_v1, 0.0 }
 0x6de   :  { %3776 = vmatmul.mubr.msk.f32.gmra.mxu0 %vm135_vm0, %v4748_v34 }
 0x6df   :  { %3778 = vmatprep.mubr.msk.f32.mxu0 %vm3904_vm1, %v3903_v51 }
 0x6e2   :  { %3779 = vmatmul.mubr.msk.f32.gmra.mxu0 %vm135_vm0, %v4757_v38 }
 0x6e3   :  { %3787 = vmatprep.mubr.msk.f32.mxu0 %vm3904_vm1, %v3903_v51 }
 0x762   :  { %v2010_v52 = vpop.f32.mrf.mxu0 }
 0x763   :  { %v2011_v53 = vadd.f32 %v2010_v52, %v4428_v5 }
 0x764   :  { %v3705_v9 = vpop.f32.mrf.mxu0 }
 0x765   :  { %v2014_v10 = vmax.f32 %v2011_v53, 0.0 }
 0x767   :  { %2015 = vst [vmem:[#allocation2 + $0xa] sm:$0x3] %v2014_v10 }
 0x79a   :  { %v2231_v0 = vpop.f32.mrf.mxu0 }
 0x79b   :  { %v2245_v27 = vmax.f32 %v2231_v0, 0.0 }
 0x79c   :  { %v3774_v63 = vpop.f32.mrf.mxu0 }
 0x79e   :  { %v2236_v50 = vpop.f32.mrf.mxu0 }
 0x79f   :  { %v2246_v17 = vmax.f32 %v2236_v50, 0.0 }
 0x7a0   :  { %v3777_v48 = vpop.f32.mrf.mxu0 }
 0x7a2   :  { %v2241_v45 = vpop.f32.mrf.mxu0 }
 0x7a3   :  { %v2247_v49 = vmax.f32 %v2241_v45, 0.0 }
 0x7a4   :  { %v3780_v12 = vpop.f32.mrf.mxu0 }
 0x7a5   :  { %3782 = vmatpush3.msk.msra.mxu0 %vm405_vm2, %v2247_v49 }
 0x7a6   :  { %3783 = vmatprep.subr.mxu0 %v3903_v51 }
 0x7a7   :  { %3784 = vmatpush3.msra.mxu0 %v2246_v17 }
 0x7a8   :  { %3785 = vmatprep.subr.mxu0 %v3903_v51 }
 0x7a9   :  { %3786 = vmatpush3.msra.mxu0 %v2245_v27 }
 0x7aa   :  { %3788 = vmatmul.mubr.msk.f32.vlgmr.msra.gmra.mxu0 %vm401_vm3, %v4775_v42  ;;  %3832 = vmatprep.subr.mxu0 %v3903_v51 }
 0x7ab   :  { %3833 = vmatpush3.msra.mxu0 %v2471_v33  ;;  %3856 = vmatprep.mubr.msk.f32.mxu0 %vm3904_vm1, %v3903_v51 }
 0x7ac   :  { %3834 = vmatprep.subr.mxu0 %v3903_v51 }
 0x7ad   :  { %3835 = vmatpush3.msra.mxu0 %v2470_v35 }
 0x7ae   :  { %3836 = vmatprep.subr.mxu0 %v3903_v51 }
 0x7af   :  { %3837 = vmatpush3.msra.mxu0 %v2469_v37 }
 0x7b0   :  { %3838 = vmatprep.subr.mxu0 %v3903_v51 }
 0x7b1   :  { %3839 = vmatpush3.msra.mxu0 %v2468_v39 }
 0x7b2   :  { %3840 = vmatprep.subr.mxu0 %v3903_v51 }
 0x7b3   :  { %3841 = vmatpush3.msra.mxu0 %v2467_v41 }
 0x7b4   :  { %3842 = vmatprep.subr.mxu0 %v3903_v51 }
 0x7b5   :  { %3843 = vmatpush3.msra.mxu0 %v2466_v20 }
 0x7b6   :  { %3844 = vmatprep.subr.mxu0 %v3903_v51 }
 0x7b7   :  { %3845 = vmatpush3.msra.mxu0 %v2465_v22 }
 0x7b8   :  { %3846 = vmatprep.subr.mxu0 %v3903_v51 }
 0x7b9   :  { %3847 = vmatpush3.msra.mxu0 %v2464_v26 }
 0x7ba   :  { %3848 = vmatprep.subr.mxu0 %v3903_v51 }
 0x7bb   :  { %3849 = vmatpush3.msra.mxu0 %v2463_v28 }
 0x7bc   :  { %3850 = vmatprep.subr.mxu0 %v3903_v51 }
 0x7bd   :  { %3851 = vmatpush3.msra.mxu0 %v2462_v19 }
 0x7be   :  { %3852 = vmatprep.subr.mxu0 %v3903_v51 }
 0x7bf   :  { %3853 = vmatpush3.msra.mxu0 %v2461_v40 }
 0x7c0   :  { %3854 = vmatprep.subr.mxu0 %v3903_v51 }
 0x7c1   :  { %3855 = vmatpush3.msra.mxu0 %v2460_v24 }
 0x7c2   :  { %3857 = vmatmul.mubr.msk.f32.vlgmr.msra.gmra.mxu0 %vm135_vm0, %v4738_v32 }
 0x7c3   :  { %3859 = vmatprep.mubr.msk.f32.mxu0 %vm3904_vm1, %v3903_v51 }
 0x7c6   :  { %3860 = vmatmul.mubr.msk.f32.gmra.mxu0 %vm135_vm0, %v4748_v34 }
 0x7c7   :  { %3862 = vmatprep.mubr.msk.f32.mxu0 %vm3904_vm1, %v3903_v51 }
 0x7ca   :  { %3863 = vmatmul.mubr.msk.f32.gmra.mxu0 %vm135_vm0, %v4757_v38 }
 0x86a   :  { %v2317_v31 = vpop.f32.mrf.mxu0 }
 0x86b   :  { %v2318_v36 = vadd.f32 %v2317_v31, %v4428_v5 }
 0x86c   :  { %v3789_v44 = vpop.f32.mrf.mxu0 }
 0x86d   :  { %v2321_v46 = vmax.f32 %v2318_v36, 0.0 }
 0x86f   :  { %2322 = vst [vmem:[#allocation2 + $0xc] sm:$0x3] %v2321_v46 }
 0x882   :  { %v2538_v47 = vpop.f32.mrf.mxu0 }
 0x883   :  { %v2552_v53 = vmax.f32 %v2538_v47, 0.0 }
 0x884   :  { %v3858_v32 = vpop.f32.mrf.mxu0 }
 0x886   :  { %v2543_v23 = vpop.f32.mrf.mxu0 }
 0x887   :  { %v2553_v34 = vmax.f32 %v2543_v23, 0.0 }
 0x888   :  { %v3861_v61 = vpop.f32.mrf.mxu0 }
 0x88a   :  { %v2548_v54 = vpop.f32.mrf.mxu0 }
 0x88b   :  { %v2554_v4 = vmax.f32 %v2548_v54, 0.0 }
 0x88c   :  { %v3864_v52 = vpop.f32.mrf.mxu0 }
 0x88d   :  { %3866 = vmatpush3.msk.msra.mxu1 %vm405_vm2, %v2554_v4 }
 0x88e   :  { %3867 = vmatprep.subr.mxu1 %v3903_v51 }
 0x88f   :  { %3868 = vmatpush3.msra.mxu1 %v2553_v34 }
 0x890   :  { %3869 = vmatprep.subr.mxu1 %v3903_v51 }
 0x891   :  { %3870 = vmatpush3.msra.mxu1 %v2552_v53 }
 0x892   :  { %3872 = vmatmul.mubr.msk.f32.vlgmr.msra.gmra.mxu1 %vm401_vm3, %v4775_v42  ;;  %3874 = vmatprep.subr.mxu1 %v3903_v51  ;;  %v2631_v42 = vld [vmem:[#allocation2] sm:$0xff] }
 0x893   :  { %3878 = vmatprep.mubr.msk.f32.mxu1 %vm3904_vm1, %v3903_v51 }
 0x952   :  { %v2624_v38 = vpop.f32.mrf.mxu1 }
 0x953   :  { %v2625_v9 = vadd.f32 %v2624_v38, %v4428_v5 }
 0x954   :  { %v3873_v10 = vpop.f32.mrf.mxu1 }
 0x955   :  { %v2628_v15 = vmax.f32 %v2625_v9, 0.0 }
 0x957   :  { %2629 = vst [vmem:[#allocation2 + $0xe] sm:$0x3] %v2628_v15 }
 0x95e   :  { %v2632_v16 = vld [vmem:[#allocation2 + $0x8] sm:$0xff] }
 0x95f   :  { %3875 = vmatpush3.msra.mxu1 %v2632_v16 }
 0x960   :  { %3876 = vmatprep.subr.mxu1 %v3903_v51 }
 0x961   :  { %3877 = vmatpush3.msra.mxu1 %v2631_v42 }
 0x962   :  { %3879 = vmatmul.mubr.msk.f32.vlgmr.msra.gmra.mxu1 %vm2639_vm4, %v2630_v21 }
 0xa22   :  { %v2709_v25 = vpop.f32.mrf.mxu1 }
 0xa23   :  { %v2710_v30 = vadd.f32 %v2709_v25, %v2637_v2 }
 0xa24   :  { %v3880_v59 = vpop.f32.mrf.mxu1 }
 0xa25   :  { %2713 = vst [vmem:[%s5051_s8] sm:$0xf] %v2710_v30 }

</bundles_post_ra>
